<compile_context>
chip_gen: v7x
topology: tpu7x:2x2x1
jax: 0.10.0
libtpu: 0.0.40
codegen_flags: <defaults>
</compile_context>

<pallas_src>
import functools

import jax
import jax.numpy as jnp
from jax import lax
from jax.experimental import pallas as pl
from jax.experimental.pallas import tpu as pltpu

BN_EPS = 1e-5


# ---------------------------------------------------------------------------
# Fused kernel: one grid step per batch element
# ---------------------------------------------------------------------------
def _fused_kernel(xp_ref, mask_ref, we_ref, be_ref, wd_ref, bd_ref, wp_ref, bp_ref,
                  o_ref, hid_ref, *, Wp, stride, M_out, has_expand, use_res):
    # xp_ref  : (1, Cin, Hp*Wp)   zero-padded input image, flat lane-dense layout
    # mask_ref: (Hp*Wp, 1)        1.0 on the original HxW interior, 0.0 on the pad ring
    # we/be   : (Cin, Chid), (1, Chid)    folded expand 1x1 (identity if expand_ratio == 1)
    # wd/bd   : (9, Chid), (1, Chid)      folded depthwise 3x3 (taps flattened kh*3+kw)
    # wp/bp   : (Cout, Chid), (Cout, 1)   folded projection 1x1
    # o_ref   : (1, Cout, Ho*Wp)  over-wide flat output (wrapper drops the 2 pad cols/row)
    # hid_ref : (L_hid, Chid)     VMEM hidden activation (flat, includes the pad ring)
    s = stride
    M_in = mask_ref.shape[0]                      # Hp * Wp
    L_hid = hid_ref.shape[0]
    Chid = hid_ref.shape[1]

    # ---- Stage 1: expand 1x1 conv (+folded BN) + ReLU6, ONE batched MXU matmul ----
    xs = xp_ref[0]                                                # (Cin, Hp*Wp)
    h = lax.dot_general(xs, we_ref[...], (((0,), (0,)), ((), ())),
                        preferred_element_type=jnp.float32)      # (Hp*Wp, Chid)
    if has_expand:
        h = jnp.clip(h + be_ref[...], 0.0, 6.0)
        # The depthwise conv pads the *hidden* tensor with zeros; bias+ReLU6 of the padded
        # x rows/cols is not zero, so zero the pad ring explicitly.
        h = h * mask_ref[...]
    # (expand_ratio == 1: hidden == x, and the padded x is already zero on the ring.)
    hid_ref[pl.ds(0, M_in), :] = h
    # Tail rows only feed the discarded over-wide output columns; zero them for determinism.
    hid_ref[pl.ds(M_in, L_hid - M_in), :] = jnp.zeros((L_hid - M_in, Chid), jnp.float32)

    # ---- Stage 2: depthwise 3x3 conv (+folded BN) + ReLU6 over the whole image ----
    # Over-wide trick: compute Wp (= W+2) output columns per row so every tap is a single
    # flat slice hid[s*p + kh*Wp + kw]; the 2 junk columns per row are dropped in the wrapper.
    dw = jnp.zeros((M_out, Chid), jnp.float32)
    for kh in range(3):
        for kw in range(3):
            off = kh * Wp + kw
            if s == 1:
                tap = hid_ref[pl.ds(off, M_out), :]
            else:
                span = hid_ref[pl.ds(off, 2 * M_out - 1), :]
                tap = lax.slice(span, (0, 0), (2 * M_out - 1, Chid), (2, 1))
            dw = dw + tap * wd_ref[pl.ds(kh * 3 + kw, 1), :]
    dw = jnp.clip(dw + bd_ref[...], 0.0, 6.0)                     # (M_out, Chid)

    # ---- Stage 3: project 1x1 conv (+folded BN), fused residual, ONE lane-dense store ----
    y = lax.dot_general(wp_ref[...], dw, (((1,), (1,)), ((), ())),
                        preferred_element_type=jnp.float32)      # (Cout, M_out)
    y = y + bp_ref[...]
    if use_res:
        # Residual x[r, c] == xp_flat[(r+1)*Wp + c + 1]; aligned with the over-wide layout
        # this is one contiguous slab starting at Wp + 1.
        y = y + xp_ref[0, :, pl.ds(Wp + 1, M_out)]
    o_ref[0, :, :] = y.astype(o_ref.dtype)


# ---------------------------------------------------------------------------
# Wrapper: NCHW in / NCHW out, like the PyTorch module (eval mode, BN folded)
# ---------------------------------------------------------------------------
def inverted_residual(x_nchw, params, *, inp, oup, stride):
    assert stride in (1, 2)
    N, C, H, W = x_nchw.shape
    assert C == inp
    Chid = params["hidden"]
    Hp, Wp = H + 2, W + 2
    Ho = (H - 1) // stride + 1
    Wo = (W - 1) // stride + 1
    use_res = (stride == 1) and (inp == oup)
    has_expand = params["expand_ratio"] != 1

    M_in = Hp * Wp                      # flat padded spatial size
    M_out = Ho * Wp                     # over-wide flat output size per image
    L_hid = (Hp + stride) * Wp          # hidden scratch rows (incl. junk tail for the taps)

    x = x_nchw.astype(jnp.float32)
    xp = jnp.pad(x, ((0, 0), (0, 0), (1, 1), (1, 1))).reshape(N, inp, M_in)

    # 0/1 mask over padded flat positions (1 on the original HxW interior).
    mrow = (jnp.arange(Hp) >= 1) & (jnp.arange(Hp) <= H)
    mcol = (jnp.arange(Wp) >= 1) & (jnp.arange(Wp) <= W)
    mask = (mrow[:, None] & mcol[None, :]).astype(jnp.float32).reshape(M_in, 1)

    w_exp = params["w_exp"].astype(jnp.float32)                    # (Cin, Chid)
    b_exp = params["b_exp"].reshape(1, Chid).astype(jnp.float32)
    w_dw = params["w_dw"].reshape(9, Chid).astype(jnp.float32)     # (3,3,Chid) -> (9, Chid)
    b_dw = params["b_dw"].reshape(1, Chid).astype(jnp.float32)
    w_proj = params["w_proj"].astype(jnp.float32)                  # (Cout, Chid)
    b_proj = params["b_proj"].reshape(oup, 1).astype(jnp.float32)

    kernel = functools.partial(
        _fused_kernel, Wp=Wp, stride=stride, M_out=M_out,
        has_expand=has_expand, use_res=use_res)

    # Explicit VMEM budget (review: re-derive against the v7x 64 MiB ceiling).
    est = 4 * (2 * inp * M_in            # double-buffered input block
               + 2 * oup * M_out         # double-buffered output block
               + L_hid * Chid            # hidden scratch
               + M_in * Chid             # Stage-1 result before the scratch store
               + 2 * M_out * Chid        # depthwise accumulator + one tap
               + inp * Chid + oup * Chid + M_in)
    vmem_limit = int(min(max(2 * est, 16 << 20), 48 << 20))

    out_flat = pl.pallas_call(
        kernel,
        grid=(N,),
        in_specs=[
            pl.BlockSpec((1, inp, M_in), lambda n: (n, 0, 0)),     # padded flat image
            pl.BlockSpec((M_in, 1), lambda n: (0, 0)),             # pad-ring mask
            pl.BlockSpec((inp, Chid), lambda n: (0, 0)),           # w_exp
            pl.BlockSpec((1, Chid), lambda n: (0, 0)),             # b_exp
            pl.BlockSpec((9, Chid), lambda n: (0, 0)),             # w_dw
            pl.BlockSpec((1, Chid), lambda n: (0, 0)),             # b_dw
            pl.BlockSpec((oup, Chid), lambda n: (0, 0)),           # w_proj
            pl.BlockSpec((oup, 1), lambda n: (0, 0)),              # b_proj
        ],
        out_specs=pl.BlockSpec((1, oup, M_out), lambda n: (n, 0, 0)),
        out_shape=jax.ShapeDtypeStruct((N, oup, M_out), jnp.float32),
        scratch_shapes=[pltpu.VMEM((L_hid, Chid), jnp.float32)],
        compiler_params=pltpu.CompilerParams(
            dimension_semantics=("parallel",),
            vmem_limit_bytes=vmem_limit),
    )(xp, mask, w_exp, b_exp, w_dw, b_dw, w_proj, b_proj)

    # Drop the 2 over-wide junk columns per output row -> NCHW (N, Cout, Ho, Wo).
    return out_flat.reshape(N, oup, Ho, Wp)[:, :, :, :Wo]


# ---------------------------------------------------------------------------
# Deterministic parameters with BatchNorm folded (eval mode)
# ---------------------------------------------------------------------------
def make_params(key, inp, oup, expand_ratio):
    hidden = int(round(inp * expand_ratio))
    ks = iter(jax.random.split(key, 20))

    def bn(c):
        g = jax.random.uniform(next(ks), (c,), minval=0.5, maxval=1.5)
        beta = jax.random.normal(next(ks), (c,)) * 0.1
        mean = jax.random.normal(next(ks), (c,)) * 0.1
        var = jax.random.uniform(next(ks), (c,), minval=0.5, maxval=1.5)
        return g, beta, mean, var

    p = {"hidden": hidden, "expand_ratio": expand_ratio}

    if expand_ratio != 1:
        w = jax.random.normal(next(ks), (hidden, inp)) * 0.2       # torch (out, in) 1x1
        g, beta, mean, var = bn(hidden)
        s = g / jnp.sqrt(var + BN_EPS)
        p["w_exp"] = (w * s[:, None]).T                            # (inp, hidden)
        p["b_exp"] = beta - mean * s
    else:
        # No expand conv in the module; the kernel uses an identity "expansion".
        p["w_exp"] = jnp.eye(inp, dtype=jnp.float32)
        p["b_exp"] = jnp.zeros((inp,), jnp.float32)

    w = jax.random.normal(next(ks), (hidden, 3, 3)) * 0.2          # torch (C,1,3,3) squeezed
    g, beta, mean, var = bn(hidden)
    s = g / jnp.sqrt(var + BN_EPS)
    p["w_dw"] = jnp.transpose(w * s[:, None, None], (1, 2, 0))     # (3, 3, C)
    p["b_dw"] = beta - mean * s

    w = jax.random.normal(next(ks), (oup, hidden)) * 0.2           # torch (out, in) 1x1
    g, beta, mean, var = bn(oup)
    s = g / jnp.sqrt(var + BN_EPS)
    p["w_proj"] = w * s[:, None]                                   # (oup, hidden)
    p["b_proj"] = beta - mean * s
    return p


# ---------------------------------------------------------------------------
# Pure-JAX reference (faithful to the module, eval-mode BN folded)
# ---------------------------------------------------------------------------
def reference(x_nchw, params, *, inp, oup, stride):
    x = jnp.transpose(x_nchw, (0, 2, 3, 1)).astype(jnp.float32)    # NHWC
    h = x
    if params["expand_ratio"] != 1:
        h = jnp.clip(jnp.einsum("nhwc,cd->nhwd", h, params["w_exp"]) + params["b_exp"],
                     0.0, 6.0)
    C = h.shape[-1]
    wd = params["w_dw"][:, :, None, :]                             # HWIO with I=1
    h = lax.conv_general_dilated(
        h, wd, (stride, stride), ((1, 1), (1, 1)),
        dimension_numbers=("NHWC", "HWIO", "NHWC"), feature_group_count=C)
    h = jnp.clip(h + params["b_dw"], 0.0, 6.0)
    y = jnp.einsum("nhwc,dc->nhwd", h, params["w_proj"]) + params["b_proj"]
    if stride == 1 and inp == oup:
        y = y + x
    return jnp.transpose(y, (0, 3, 1, 2))                          # NCHW


if __name__ == "__main__":
    key = jax.random.PRNGKey(0)

    # (inp, oup, stride, expand_ratio, N, H, W)
    configs = [
        (8, 8, 1, 4, 2, 16, 16),    # residual path active
        (8, 16, 2, 4, 2, 16, 16),   # strided block, no residual
        (8, 8, 1, 1, 2, 16, 16),    # expand_ratio == 1 (no expand conv), residual
    ]

    for i, (inp, oup, stride, er, N, H, W) in enumerate(configs):
        kx, kp = jax.random.split(jax.random.fold_in(key, i))
        x = jax.random.normal(kx, (N, inp, H, W), dtype=jnp.float32)
        params = make_params(kp, inp, oup, er)

        out = inverted_residual(x, params, inp=inp, oup=oup, stride=stride)
        out = jax.block_until_ready(out)

        ref = reference(x, params, inp=inp, oup=oup, stride=stride)
        assert out.shape == ref.shape, (out.shape, ref.shape)
        err = float(jnp.max(jnp.abs(out - ref)))
        assert jnp.allclose(out, ref, atol=1e-3, rtol=1e-3), err

    print("KERNEL_OK")
</pallas_src>

<mosaic_0001>
module attributes {stable_mosaic.version = 11 : i64} {
  func.func @_fused_kernel(%arg0: i32, %arg1: memref<1x8x324xf32, #tpu.memory_space<vmem>>, %arg2: memref<324x1xf32, #tpu.memory_space<vmem>>, %arg3: memref<8x32xf32, #tpu.memory_space<vmem>>, %arg4: memref<1x32xf32, #tpu.memory_space<vmem>>, %arg5: memref<9x32xf32, #tpu.memory_space<vmem>>, %arg6: memref<1x32xf32, #tpu.memory_space<vmem>>, %arg7: memref<8x32xf32, #tpu.memory_space<vmem>>, %arg8: memref<8x1xf32, #tpu.memory_space<vmem>>, %arg9: memref<1x8x288xf32, #tpu.memory_space<vmem>>, %arg10: memref<342x32xf32, #tpu.memory_space<vmem>>) attributes {dimension_semantics = [#tpu.dimension_semantics<parallel>], iteration_bounds = array<i64: 2>, scalar_prefetch = 0 : i64, scratch_operands = 1 : i64, tpu.core_type = #tpu.core_type<tc>, window_params = [{transform_indices = @transform_0, window_bounds = array<i64: 1, 8, 324>}, {pipeline_mode = #tpu.pipeline_mode<synchronous>, transform_indices = @transform_1, window_bounds = array<i64: 324, 1>}, {pipeline_mode = #tpu.pipeline_mode<synchronous>, transform_indices = @transform_2, window_bounds = array<i64: 8, 32>}, {pipeline_mode = #tpu.pipeline_mode<synchronous>, transform_indices = @transform_3, window_bounds = array<i64: 1, 32>}, {pipeline_mode = #tpu.pipeline_mode<synchronous>, transform_indices = @transform_4, window_bounds = array<i64: 9, 32>}, {pipeline_mode = #tpu.pipeline_mode<synchronous>, transform_indices = @transform_5, window_bounds = array<i64: 1, 32>}, {pipeline_mode = #tpu.pipeline_mode<synchronous>, transform_indices = @transform_6, window_bounds = array<i64: 8, 32>}, {pipeline_mode = #tpu.pipeline_mode<synchronous>, transform_indices = @transform_7, window_bounds = array<i64: 8, 1>}, {transform_indices = @transform_8, window_bounds = array<i64: 1, 8, 288>}]} {
    %c0 = arith.constant 0 : index
    %c0_0 = arith.constant 0 : index
    %c0_1 = arith.constant 0 : index
    %0 = vector.load %arg1[%c0, %c0_0, %c0_1] : memref<1x8x324xf32, #tpu.memory_space<vmem>>, vector<1x8x324xf32>
    %1 = vector.shape_cast %0 : vector<1x8x324xf32> to vector<8x324xf32>
    %c0_2 = arith.constant 0 : index
    %c0_3 = arith.constant 0 : index
    %2 = vector.load %arg3[%c0_2, %c0_3] : memref<8x32xf32, #tpu.memory_space<vmem>>, vector<8x32xf32>
    %cst = arith.constant dense<0.000000e+00> : vector<324x32xf32>
    %3 = tpu.matmul %1, %2, %cst {dimension_numbers = #tpu.dot_dimension_numbers<[0], [0], [1], [1], [0, 1, 1, 1], [], []>} : vector<8x324xf32>, vector<8x32xf32>, vector<324x32xf32> -> vector<324x32xf32>
    %c0_4 = arith.constant 0 : index
    %c0_5 = arith.constant 0 : index
    %4 = vector.load %arg4[%c0_4, %c0_5] : memref<1x32xf32, #tpu.memory_space<vmem>>, vector<1x32xf32>
    %5 = vector.broadcast %4 : vector<1x32xf32> to vector<324x32xf32>
    %6 = arith.addf %3, %5 : vector<324x32xf32>
    %cst_6 = arith.constant 0.000000e+00 : f32
    %cst_7 = arith.constant 6.000000e+00 : f32
    %7 = vector.broadcast %cst_6 : f32 to vector<324x32xf32>
    %8 = arith.maximumf %7, %6 : vector<324x32xf32>
    %9 = vector.broadcast %cst_7 : f32 to vector<324x32xf32>
    %10 = arith.minimumf %9, %8 : vector<324x32xf32>
    %c0_8 = arith.constant 0 : index
    %c0_9 = arith.constant 0 : index
    %11 = vector.load %arg2[%c0_8, %c0_9] : memref<324x1xf32, #tpu.memory_space<vmem>>, vector<324x1xf32>
    %12 = vector.broadcast %11 : vector<324x1xf32> to vector<324x32xf32>
    %13 = arith.mulf %10, %12 : vector<324x32xf32>
    %c0_10 = arith.constant 0 : index
    %c0_11 = arith.constant 0 : index
    %14 = vector.load %arg10[%c0_10, %c0_11] : memref<342x32xf32, #tpu.memory_space<vmem>>, vector<324x32xf32>
    tpu.vector_store %arg10[%c0_10, %c0_11], %13 {strides = array<i32>} : memref<342x32xf32, #tpu.memory_space<vmem>>, vector<324x32xf32>,
    %cst_12 = arith.constant 0.000000e+00 : f32
    %15 = vector.broadcast %cst_12 : f32 to vector<18x32xf32>
    %c324 = arith.constant 324 : index
    %c0_13 = arith.constant 0 : index
    %16 = vector.load %arg10[%c324, %c0_13] : memref<342x32xf32, #tpu.memory_space<vmem>>, vector<18x32xf32>
    tpu.vector_store %arg10[%c324, %c0_13], %15 {strides = array<i32>} : memref<342x32xf32, #tpu.memory_space<vmem>>, vector<18x32xf32>,
    %cst_14 = arith.constant 0.000000e+00 : f32
    %17 = vector.broadcast %cst_14 : f32 to vector<288x32xf32>
    %c0_15 = arith.constant 0 : index
    %c0_16 = arith.constant 0 : index
    %18 = vector.load %arg10[%c0_15, %c0_16] : memref<342x32xf32, #tpu.memory_space<vmem>>, vector<288x32xf32>
    %c0_17 = arith.constant 0 : index
    %c0_18 = arith.constant 0 : index
    %19 = vector.load %arg5[%c0_17, %c0_18] : memref<9x32xf32, #tpu.memory_space<vmem>>, vector<1x32xf32>
    %20 = vector.broadcast %19 : vector<1x32xf32> to vector<288x32xf32>
    %21 = arith.mulf %18, %20 : vector<288x32xf32>
    %22 = arith.addf %17, %21 : vector<288x32xf32>
    %c1 = arith.constant 1 : index
    %c0_19 = arith.constant 0 : index
    %23 = vector.load %arg10[%c1, %c0_19] : memref<342x32xf32, #tpu.memory_space<vmem>>, vector<288x32xf32>
    %c1_20 = arith.constant 1 : index
    %c0_21 = arith.constant 0 : index
    %24 = vector.load %arg5[%c1_20, %c0_21] : memref<9x32xf32, #tpu.memory_space<vmem>>, vector<1x32xf32>
    %25 = vector.broadcast %24 : vector<1x32xf32> to vector<288x32xf32>
    %26 = arith.mulf %23, %25 : vector<288x32xf32>
    %27 = arith.addf %22, %26 : vector<288x32xf32>
    %c2 = arith.constant 2 : index
    %c0_22 = arith.constant 0 : index
    %28 = vector.load %arg10[%c2, %c0_22] : memref<342x32xf32, #tpu.memory_space<vmem>>, vector<288x32xf32>
    %c2_23 = arith.constant 2 : index
    %c0_24 = arith.constant 0 : index
    %29 = vector.load %arg5[%c2_23, %c0_24] : memref<9x32xf32, #tpu.memory_space<vmem>>, vector<1x32xf32>
    %30 = vector.broadcast %29 : vector<1x32xf32> to vector<288x32xf32>
    %31 = arith.mulf %28, %30 : vector<288x32xf32>
    %32 = arith.addf %27, %31 : vector<288x32xf32>
    %c18 = arith.constant 18 : index
    %c0_25 = arith.constant 0 : index
    %33 = vector.load %arg10[%c18, %c0_25] : memref<342x32xf32, #tpu.memory_space<vmem>>, vector<288x32xf32>
    %c3 = arith.constant 3 : index
    %c0_26 = arith.constant 0 : index
    %34 = vector.load %arg5[%c3, %c0_26] : memref<9x32xf32, #tpu.memory_space<vmem>>, vector<1x32xf32>
    %35 = vector.broadcast %34 : vector<1x32xf32> to vector<288x32xf32>
    %36 = arith.mulf %33, %35 : vector<288x32xf32>
    %37 = arith.addf %32, %36 : vector<288x32xf32>
    %c19 = arith.constant 19 : index
    %c0_27 = arith.constant 0 : index
    %38 = vector.load %arg10[%c19, %c0_27] : memref<342x32xf32, #tpu.memory_space<vmem>>, vector<288x32xf32>
    %c4 = arith.constant 4 : index
    %c0_28 = arith.constant 0 : index
    %39 = vector.load %arg5[%c4, %c0_28] : memref<9x32xf32, #tpu.memory_space<vmem>>, vector<1x32xf32>
    %40 = vector.broadcast %39 : vector<1x32xf32> to vector<288x32xf32>
    %41 = arith.mulf %38, %40 : vector<288x32xf32>
    %42 = arith.addf %37, %41 : vector<288x32xf32>
    %c20 = arith.constant 20 : index
    %c0_29 = arith.constant 0 : index
    %43 = vector.load %arg10[%c20, %c0_29] : memref<342x32xf32, #tpu.memory_space<vmem>>, vector<288x32xf32>
    %c5 = arith.constant 5 : index
    %c0_30 = arith.constant 0 : index
    %44 = vector.load %arg5[%c5, %c0_30] : memref<9x32xf32, #tpu.memory_space<vmem>>, vector<1x32xf32>
    %45 = vector.broadcast %44 : vector<1x32xf32> to vector<288x32xf32>
    %46 = arith.mulf %43, %45 : vector<288x32xf32>
    %47 = arith.addf %42, %46 : vector<288x32xf32>
    %c36 = arith.constant 36 : index
    %c0_31 = arith.constant 0 : index
    %48 = vector.load %arg10[%c36, %c0_31] : memref<342x32xf32, #tpu.memory_space<vmem>>, vector<288x32xf32>
    %c6 = arith.constant 6 : index
    %c0_32 = arith.constant 0 : index
    %49 = vector.load %arg5[%c6, %c0_32] : memref<9x32xf32, #tpu.memory_space<vmem>>, vector<1x32xf32>
    %50 = vector.broadcast %49 : vector<1x32xf32> to vector<288x32xf32>
    %51 = arith.mulf %48, %50 : vector<288x32xf32>
    %52 = arith.addf %47, %51 : vector<288x32xf32>
    %c37 = arith.constant 37 : index
    %c0_33 = arith.constant 0 : index
    %53 = vector.load %arg10[%c37, %c0_33] : memref<342x32xf32, #tpu.memory_space<vmem>>, vector<288x32xf32>
    %c7 = arith.constant 7 : index
    %c0_34 = arith.constant 0 : index
    %54 = vector.load %arg5[%c7, %c0_34] : memref<9x32xf32, #tpu.memory_space<vmem>>, vector<1x32xf32>
    %55 = vector.broadcast %54 : vector<1x32xf32> to vector<288x32xf32>
    %56 = arith.mulf %53, %55 : vector<288x32xf32>
    %57 = arith.addf %52, %56 : vector<288x32xf32>
    %c38 = arith.constant 38 : index
    %c0_35 = arith.constant 0 : index
    %58 = vector.load %arg10[%c38, %c0_35] : memref<342x32xf32, #tpu.memory_space<vmem>>, vector<288x32xf32>
    %c8 = arith.constant 8 : index
    %c0_36 = arith.constant 0 : index
    %59 = vector.load %arg5[%c8, %c0_36] : memref<9x32xf32, #tpu.memory_space<vmem>>, vector<1x32xf32>
    %60 = vector.broadcast %59 : vector<1x32xf32> to vector<288x32xf32>
    %61 = arith.mulf %58, %60 : vector<288x32xf32>
    %62 = arith.addf %57, %61 : vector<288x32xf32>
    %c0_37 = arith.constant 0 : index
    %c0_38 = arith.constant 0 : index
    %63 = vector.load %arg6[%c0_37, %c0_38] : memref<1x32xf32, #tpu.memory_space<vmem>>, vector<1x32xf32>
    %64 = vector.broadcast %63 : vector<1x32xf32> to vector<288x32xf32>
    %65 = arith.addf %62, %64 : vector<288x32xf32>
    %cst_39 = arith.constant 0.000000e+00 : f32
    %cst_40 = arith.constant 6.000000e+00 : f32
    %66 = vector.broadcast %cst_39 : f32 to vector<288x32xf32>
    %67 = arith.maximumf %66, %65 : vector<288x32xf32>
    %68 = vector.broadcast %cst_40 : f32 to vector<288x32xf32>
    %69 = arith.minimumf %68, %67 : vector<288x32xf32>
    %c0_41 = arith.constant 0 : index
    %c0_42 = arith.constant 0 : index
    %70 = vector.load %arg7[%c0_41, %c0_42] : memref<8x32xf32, #tpu.memory_space<vmem>>, vector<8x32xf32>
    %cst_43 = arith.constant dense<0.000000e+00> : vector<8x288xf32>
    %71 = tpu.matmul %70, %69, %cst_43 {dimension_numbers = #tpu.dot_dimension_numbers<[1], [1], [0], [0], [0, 0, 1, 0], [], []>} : vector<8x32xf32>, vector<288x32xf32>, vector<8x288xf32> -> vector<8x288xf32>
    %c0_44 = arith.constant 0 : index
    %c0_45 = arith.constant 0 : index
    %72 = vector.load %arg8[%c0_44, %c0_45] : memref<8x1xf32, #tpu.memory_space<vmem>>, vector<8x1xf32>
    %73 = vector.broadcast %72 : vector<8x1xf32> to vector<8x288xf32>
    %74 = arith.addf %71, %73 : vector<8x288xf32>
    %c0_46 = arith.constant 0 : index
    %c0_47 = arith.constant 0 : index
    %c19_48 = arith.constant 19 : index
    %75 = vector.load %arg1[%c0_46, %c0_47, %c19_48] : memref<1x8x324xf32, #tpu.memory_space<vmem>>, vector<1x8x288xf32>
    %76 = vector.shape_cast %75 : vector<1x8x288xf32> to vector<8x288xf32>
    %77 = arith.addf %74, %76 : vector<8x288xf32>
    %c0_49 = arith.constant 0 : index
    %c0_50 = arith.constant 0 : index
    %c0_51 = arith.constant 0 : index
    %78 = vector.load %arg9[%c0_49, %c0_50, %c0_51] : memref<1x8x288xf32, #tpu.memory_space<vmem>>, vector<1x8x288xf32>
    %79 = vector.shape_cast %78 : vector<1x8x288xf32> to vector<8x288xf32>
    %80 = vector.shape_cast %77 : vector<8x288xf32> to vector<1x8x288xf32>
    tpu.vector_store %arg9[%c0_49, %c0_50, %c0_51], %80 {strides = array<i32>} : memref<1x8x288xf32, #tpu.memory_space<vmem>>, vector<1x8x288xf32>,
    return
  }
  func.func @transform_0(%arg0: i32) -> (i32, i32, i32) {
    %c0_i32 = arith.constant 0 : i32
    %c0_i32_0 = arith.constant 0 : i32
    %c0_i32_1 = arith.constant 0 : i32
    return %arg0, %c0_i32, %c0_i32_0 : i32, i32, i32
  }
  func.func @transform_1(%arg0: i32) -> (i32, i32) {
    %c0_i32 = arith.constant 0 : i32
    %c0_i32_0 = arith.constant 0 : i32
    %c0_i32_1 = arith.constant 0 : i32
    return %c0_i32, %c0_i32_0 : i32, i32
  }
  func.func @transform_2(%arg0: i32) -> (i32, i32) {
    %c0_i32 = arith.constant 0 : i32
    %c0_i32_0 = arith.constant 0 : i32
    %c0_i32_1 = arith.constant 0 : i32
    return %c0_i32, %c0_i32_0 : i32, i32
  }
  func.func @transform_3(%arg0: i32) -> (i32, i32) {
    %c0_i32 = arith.constant 0 : i32
    %c0_i32_0 = arith.constant 0 : i32
    %c0_i32_1 = arith.constant 0 : i32
    return %c0_i32, %c0_i32_0 : i32, i32
  }
  func.func @transform_4(%arg0: i32) -> (i32, i32) {
    %c0_i32 = arith.constant 0 : i32
    %c0_i32_0 = arith.constant 0 : i32
    %c0_i32_1 = arith.constant 0 : i32
    return %c0_i32, %c0_i32_0 : i32, i32
  }
  func.func @transform_5(%arg0: i32) -> (i32, i32) {
    %c0_i32 = arith.constant 0 : i32
    %c0_i32_0 = arith.constant 0 : i32
    %c0_i32_1 = arith.constant 0 : i32
    return %c0_i32, %c0_i32_0 : i32, i32
  }
  func.func @transform_6(%arg0: i32) -> (i32, i32) {
    %c0_i32 = arith.constant 0 : i32
    %c0_i32_0 = arith.constant 0 : i32
    %c0_i32_1 = arith.constant 0 : i32
    return %c0_i32, %c0_i32_0 : i32, i32
  }
  func.func @transform_7(%arg0: i32) -> (i32, i32) {
    %c0_i32 = arith.constant 0 : i32
    %c0_i32_0 = arith.constant 0 : i32
    %c0_i32_1 = arith.constant 0 : i32
    return %c0_i32, %c0_i32_0 : i32, i32
  }
  func.func @transform_8(%arg0: i32) -> (i32, i32, i32) {
    %c0_i32 = arith.constant 0 : i32
    %c0_i32_0 = arith.constant 0 : i32
    %c0_i32_1 = arith.constant 0 : i32
    return %arg0, %c0_i32, %c0_i32_0 : i32, i32, i32
  }
}

</mosaic_0001>

<bundles_post_ra>
// kernel: tpu_custom_call.1
= control target key start
LH: loop header
LB: loop body
LE: loop exit
PB: predicated region body
PF: predicated region fallthrough
CT: control target
= control target key end

     0   :  { %13 = vsyncpa [#allocation4], 0  ;;  %s4575_s0 = inlined_call_operand.vmem [shape: f32[2,8,324], index: 0, kind: input, shape index: {}]   ;;  %s4576_s1 = inlined_call_operand.vmem [shape: f32[324,1], index: 1, kind: input, shape index: {}]   ;;  %s4577_s2 = inlined_call_operand.vmem [shape: f32[8,32], index: 2, kind: input, shape index: {}]   ;;  %s4578_s3 = inlined_call_operand.vmem [shape: f32[1,32], index: 3, kind: input, shape index: {}]   ;;  %s4579_s4 = inlined_call_operand.vmem [shape: f32[9,32], index: 4, kind: input, shape index: {}]   ;;  %s4580_s5 = inlined_call_operand.vmem [shape: f32[1,32], index: 5, kind: input, shape index: {}]   ;;  %s4581_s6 = inlined_call_operand.vmem [shape: f32[8,32], index: 6, kind: input, shape index: {}]   ;;  %s4582_s7 = inlined_call_operand.vmem [shape: f32[8,1], index: 7, kind: input, shape index: {}]   ;;  %s4583_s8 = inlined_call_operand.hbm [shape: f32[2,8,288], index: 8, kind: output, shape index: {}]  }
   0x1   :  { %15 = vsyncpa [#allocation4 + $0x1], 0  ;;  %s3209_s27 = smov 0   ;;  %s3211_s28 = smov 0  }
   0x2   :  { %s3213_s29 = smov 0   ;;  %s3215_s30 = smov 0  }
   0x3 LB: > { %s3230_s9 = sadd.s32 4294967295, %s3156_s30   ;;  %s2642_s10 = sadd.s32 4294967294, %s3156_s30   ;;  %s3156_s30 = sphi %s3215_s30, %s4597_s30   ;;  %s3152_s29 = sphi %s3213_s29, %s4596_s29   ;;  %s3148_s28 = sphi %s3211_s28, %s4595_s28   ;;  %s3144_s27 = sphi %s3209_s27, %s4594_s27  }
   0x4   : > { %s3234_s11 = sadd.s32 1, %s3156_s30   ;;  %s201_s12 = sadd.s32 1, %s3152_s29 }
   0x5   : > { %s198_s13 = ssub.s32 %s3156_s30, %s3234_s11  ;;  %p211_p0 = scmp.ne.s32.totalorder %s3152_s29, %s3148_s28 }
   0x6   : > { %p199_p1 = scmp.eq.s32.totalorder %s198_s13, 0  ;;  %p212_p2 = scmp.eq.s32.totalorder %s3230_s9, 1 }
   0x7   : > { %p217_p3 = scmp.ne.s32.totalorder %s3148_s28, %s3144_s27  ;;  %p218_p4 = scmp.eq.s32.totalorder %s2642_s10, 1 }
   0x8   : > { %s3245_s14 = scalar_select %p199_p1, %s3152_s29, %s201_s12  }
   0x9   : > { %p3247_p5 = por %p212_p2, %p211_p0  ;;  %p3251_p6 = por %p218_p4, %p217_p3 }
   0xa   : > { %p2645_p7 = scmp.ge.s32.totalorder %s3156_s30, 1  ;;  %p265_p8 = scmp.lt.s32.totalorder %s3156_s30, 3 }
   0xc   : > { %p266_p9 = pnand %p2645_p7, %p265_p8 }
   0xd   : > { %p299_p10 = scmp.lt.s32.totalorder (!%p266_p9), %s3230_s9, 1  ;;  %v4584_v0 = vmov (!%p266_p9), 0.0   ;;  %v307_v1 = vld [vmem:[%s4577_s2] sm:$0xff] (!%p266_p9)  ;;  %vm3159_vm0 = vmmov (!%p266_p9), 0   ;;  %v3160_v4 = vmov (!%p266_p9), 0   ;;  %v905_v7 = vld [vmem:[%s4576_s1 + $0x90] sm:$0xff] (!%p266_p9) }
   0xe   : > { %269 = sbr.rel (%p266_p9) target bundleno = 869 (0x365), region = 52  ;;  %2821 = vmatprep.subr.mxu0 (!%p266_p9), %v4584_v0  ;;  %3013 = vmatprep.subr.mxu1 (!%p266_p9), %v4584_v0  ;;  %v903_v6 = vld [vmem:[%s4576_s1 + $0x80] sm:$0xff] (!%p266_p9)  ;;  %v888_v9 = vld [vmem:[%s4576_s1 + $0x8] sm:$0xff] (!%p266_p9)  ;;  %v889_v10 = vld [vmem:[%s4576_s1 + $0x10] sm:$0xff] (!%p266_p9)  ;;  %vm411_vm1 = vcmask (!%p266_p9), 64512   ;;  %vm1174_vm2 = vcmask (!%p266_p9), 261120  }
   0xf   : > { %2822 = vmatpush3.msra.mxu0 (!%p266_p9), %v307_v1  ;;  %2823 = vmatprep.mubr.msk.f32.mxu0 (!%p266_p9), %vm3159_vm0, %v4584_v0  ;;  %v887_v8 = vld [vmem:[%s4576_s1] sm:$0xff] (!%p266_p9)  ;;  %v906_v11 = vld [vmem:[%s4576_s1 + $0x98] sm:$0xff] (!%p266_p9)  ;;  %v908_v15 = vld [vmem:[%s4576_s1 + $0xa8] sm:$0xff] (!%p266_p9)  ;;  %1217 = vst.msk [vmem:[#allocation2 + $0x144] sm:$0xff] (!%p266_p9), %vm1174_vm2, %v4584_v0  ;;  %s3161_s21 = smov (!%p266_p9), 109   ;;  %vm1215_vm4 = vcmask (!%p266_p9), 257024  }
  0x10   : > { %3014 = vmatpush3.msra.mxu1 (!%p266_p9), %v307_v1  ;;  %2892 = vmatprep.mubr.msk.f32.mxu1 (!%p266_p9), %vm3159_vm0, %v4584_v0  ;;  %v907_v12 = vld [vmem:[%s4576_s1 + $0xa0] sm:$0xff] (!%p266_p9)  ;;  %v890_v13 = vld [vmem:[%s4576_s1 + $0x18] sm:$0xff] (!%p266_p9)  ;;  %v909_v16 = vld [vmem:[%s4576_s1 + $0xb0] sm:$0xff] (!%p266_p9)  ;;  %s296_s18 = sand.u32 (!%p266_p9), 1, %s3148_s28   ;;  %vm2556_vm5 = vcmask (!%p266_p9), 891904  }
  0x11   : > { %v891_v14 = vld [vmem:[%s4576_s1 + $0x20] sm:$0xff] (!%p266_p9)  ;;  %v892_v17 = vld [vmem:[%s4576_s1 + $0x28] sm:$0xff] (!%p266_p9)  ;;  %v893_v18 = vld [vmem:[%s4576_s1 + $0x30] sm:$0xff] (!%p266_p9)  ;;  %s2569_s26 = scalar_lea.sflag (!%p266_p9), [#allocation4], %s296_s18 }
  0x12   : > { %v910_v19 = vld [vmem:[%s4576_s1 + $0xb8] sm:$0xff] (!%p266_p9)  ;;  %v911_v20 = vld [vmem:[%s4576_s1 + $0xc0] sm:$0xff] (!%p266_p9)  ;;  %v912_v23 = vld [vmem:[%s4576_s1 + $0xc8] sm:$0xff] (!%p266_p9) }
  0x13   : > { %v894_v21 = vld [vmem:[%s4576_s1 + $0x38] sm:$0xff] (!%p266_p9)  ;;  %v895_v22 = vld [vmem:[%s4576_s1 + $0x40] sm:$0xff] (!%p266_p9)  ;;  %v913_v25 = vld [vmem:[%s4576_s1 + $0xd0] sm:$0xff] (!%p266_p9) }
  0x14   : > { %v896_v27 = vld [vmem:[%s4576_s1 + $0x48] sm:$0xff] (!%p266_p9)  ;;  %v897_v29 = vld [vmem:[%s4576_s1 + $0x50] sm:$0xff] (!%p266_p9)  ;;  %v914_v31 = vld [vmem:[%s4576_s1 + $0xd8] sm:$0xff] (!%p266_p9) }
  0x15   : > { %s300_s19 = scalar_select %p299_p10, %s3230_s9, 1  ;;  %v915_v33 = vld [vmem:[%s4576_s1 + $0xe0] sm:$0xff]  ;;  %v898_v35 = vld [vmem:[%s4576_s1 + $0x58] sm:$0xff]  ;;  %v916_v39 = vld [vmem:[%s4576_s1 + $0xe8] sm:$0xff] }
  0x16   : > { %v899_v37 = vld [vmem:[%s4576_s1 + $0x60] sm:$0xff]  ;;  %v904_v41 = vld [vmem:[%s4576_s1 + $0x88] sm:$0xff]  ;;  %v917_v44 = vld [vmem:[%s4576_s1 + $0xf0] sm:$0xff] }
  0x17   : > { %s3016_s20 = smul.u32 24, %s300_s19  ;;  %v900_v42 = vld [vmem:[%s4576_s1 + $0x68] sm:$0xff]  ;;  %v918_v45 = vld [vmem:[%s4576_s1 + $0xf8] sm:$0xff]  ;;  %v901_v47 = vld [vmem:[%s4576_s1 + $0x70] sm:$0xff] }
  0x18   : > { %v902_v48 = vld [vmem:[%s4576_s1 + $0x78] sm:$0xff]  ;;  %v919_v50 = vld [vmem:[%s4576_s1 + $0x100] sm:$0xff]  ;;  %v921_v51 = vld [vmem:[%s4576_s1 + $0x110] sm:$0xff]  ;;  %s3015_s19 = smul.u32 24, %s296_s18 }
  0x19   : > { %s3271_s23 = scalar_lea.vmem %s4575_s0, %s3016_s20  ;;  %v920_v53 = vld [vmem:[%s4576_s1 + $0x108] sm:$0xff]  ;;  %v923_v54 = vld [vmem:[%s4576_s1 + $0x120] sm:$0xff]  ;;  %v922_v56 = vld [vmem:[%s4576_s1 + $0x118] sm:$0xff] }
  0x1a   : > { %v304_v2 = vld [vmem:[%s3271_s23] sm:$0xff]  ;;  %v306_v3 = vld [vmem:[%s3271_s23 + $0x10] sm:$0xff]  ;;  %v305_v5 = vld [vmem:[%s3271_s23 + $0x8] sm:$0xff]  ;;  %s298_s20 = scalar_lea.vmem [#allocation3], %s3015_s19 }
  0x1b   : > { %315 = vxpose.xlu0.b32.start.end [1/1] (short) %v304_v2, 128  ;;  %379 = vxpose.xlu1.b32.start.end [1/1] (short) (narrow) %v306_v3, 72  ;;  %v925_v57 = vld [vmem:[%s4576_s1 + $0x130] sm:$0xff]  ;;  %v924_v60 = vld [vmem:[%s4576_s1 + $0x128] sm:$0xff]  ;;  %v927_v61 = vld [vmem:[%s4576_s1 + $0x140] sm:$0xf] }
  0x1c   : > { %v926_v63 = vld [vmem:[%s4576_s1 + $0x138] sm:$0xff]  ;;  %v2286_v3 = vld [vmem:[%s4582_s7] sm:$0xff]  ;;  %vm3978_vm3 = vmpackc.low %vm1174_vm2, %vm1174_vm2 }
  0x39   : > { %3062 = vset.pattern.permute.xlu1 %v3160_v4 }
  0x58   : > { %347 = vxpose.xlu0.b32.start.end [1/1] (short) %v305_v5, 128 }
  0x59   : > { %1010 = vperm.xlu1 %3062, %v903_v6  }
  0x5d   : > { %1020 = vperm.xlu1 %3062, %v905_v7  }
  0x61   : > { %930 = vperm.xlu1 %3062, %v887_v8  }
  0x65   : > { %935 = vperm.xlu1 %3062, %v888_v9  }
  0x69   : > { %940 = vperm.xlu1 %3062, %v889_v10  }
  0x6d   : > { %1025 = vperm.xlu1 %3062, %v906_v11  }
  0x71   : > { %1030 = vperm.xlu1 %3062, %v907_v12  }
  0x75   : > { %945 = vperm.xlu1 %3062, %v890_v13  }
  0x79   : > { %950 = vperm.xlu1 %3062, %v891_v14  }
  0x7d   : > { %1035 = vperm.xlu1 %3062, %v908_v15  }
  0x81   : > { %1040 = vperm.xlu1 %3062, %v909_v16   ;;  %3063 = vset.pattern.permute.xlu0 %v3160_v4 }
  0x85   : > { %955 = vperm.xlu1 %3062, %v892_v17  }
  0x89   : > { %960 = vperm.xlu1 %3062, %v893_v18  }
  0x8d   : > { %1045 = vperm.xlu1 %3062, %v910_v19  }
  0x91   : > { %1050 = vperm.xlu1 %3062, %v911_v20  }
  0x95   : > { %965 = vperm.xlu1 %3062, %v894_v21  }
  0x99   : > { %970 = vperm.xlu1 %3062, %v895_v22  }
  0x9b   : > { %v331_v24 = vpop.trf.xlu0  ;;  %v3432_v59 = vpop.trf.xlu1 }
  0x9c   : > { %2824 = vmatmul.mubr.msk.f32.vlgmr.msra.gmra.mrb[0].mxu0 %vm411_vm1, %v331_v24 }
  0x9d   : > { %2826 = vmatprep.mubr.msk.f32.mxu0 %vm3159_vm0, %v4584_v0  ;;  %1055 = vperm.xlu1 %3062, %v912_v23  }
  0x9f   : > { %v332_v26 = vpop.trf.xlu0  ;;  %v3449_v1 = vpop.trf.xlu1 }
  0xa0   : > { %2827 = vmatmul.mubr.msk.f32.gmra.mrb[2].mxu0 %vm411_vm1, %v332_v26 }
  0xa1   : > { %2829 = vmatprep.mubr.msk.f32.mxu0 %vm3159_vm0, %v4584_v0  ;;  %1060 = vperm.xlu1 %3062, %v913_v25  }
  0xa3   : > { %v333_v28 = vpop.trf.xlu0  ;;  %v397_v5 = vpop.trf.xlu1 }
  0xa4   : > { %2830 = vmatmul.mubr.msk.f32.gmra.mrb[4].mxu0 %vm411_vm1, %v333_v28 }
  0xa5   : > { %2832 = vmatprep.mubr.msk.f32.mxu0 %vm3159_vm0, %v4584_v0  ;;  %975 = vperm.xlu1 %3062, %v896_v27  }
  0xa7   : > { %v334_v30 = vpop.trf.xlu0  ;;  %v398_v7 = vpop.trf.xlu1 }
  0xa8   : > { %2833 = vmatmul.mubr.msk.f32.gmra.mrb[6].mxu0 %vm411_vm1, %v334_v30 }
  0xa9   : > { %2835 = vmatprep.mubr.msk.f32.mxu0 %vm3159_vm0, %v4584_v0  ;;  %980 = vperm.xlu1 %3062, %v897_v29  }
  0xab   : > { %v335_v32 = vpop.trf.xlu0  ;;  %v399_v10 = vpop.trf.xlu1 }
  0xac   : > { %2836 = vmatmul.mubr.msk.f32.gmra.mrb[8].mxu0 %vm411_vm1, %v335_v32 }
  0xad   : > { %2838 = vmatprep.mubr.msk.f32.mxu0 %vm3159_vm0, %v4584_v0  ;;  %1065 = vperm.xlu1 %3062, %v914_v31  }
  0xaf   : > { %v336_v34 = vpop.trf.xlu0  ;;  %v400_v12 = vpop.trf.xlu1 }
  0xb0   : > { %2839 = vmatmul.mubr.msk.f32.gmra.mrb[10].mxu0 %vm411_vm1, %v336_v34 }
  0xb1   : > { %2841 = vmatprep.mubr.msk.f32.mxu0 %vm3159_vm0, %v4584_v0  ;;  %1070 = vperm.xlu1 %3062, %v915_v33  }
  0xb3   : > { %v337_v36 = vpop.trf.xlu0  ;;  %v401_v15 = vpop.trf.xlu1 }
  0xb4   : > { %2842 = vmatmul.mubr.msk.f32.gmra.mrb[12].mxu0 %vm411_vm1, %v337_v36 }
  0xb5   : > { %2844 = vmatprep.mubr.msk.f32.mxu0 %vm3159_vm0, %v4584_v0  ;;  %985 = vperm.xlu1 %3062, %v898_v35  }
  0xb7   : > { %v338_v38 = vpop.trf.xlu0  ;;  %v402_v17 = vpop.trf.xlu1 }
  0xb8   : > { %2845 = vmatmul.mubr.msk.f32.gmra.mrb[14].mxu0 %vm411_vm1, %v338_v38 }
  0xb9   : > { %2847 = vmatprep.mubr.msk.f32.mxu0 %vm3159_vm0, %v4584_v0  ;;  %990 = vperm.xlu1 %3062, %v899_v37  }
  0xbb   : > { %v339_v40 = vpop.trf.xlu0  ;;  %v403_v20 = vpop.trf.xlu1 }
  0xbc   : > { %2848 = vmatmul.mubr.msk.f32.gmra.mrb[16].mxu0 %vm411_vm1, %v339_v40 }
  0xbd   : > { %2850 = vmatprep.mubr.msk.f32.mxu0 %vm3159_vm0, %v4584_v0  ;;  %1075 = vperm.xlu1 %3062, %v916_v39  }
  0xbe   : > { %1015 = vperm.xlu0 %3063, %v904_v41  }
  0xbf   : > { %v340_v43 = vpop.trf.xlu0 }
  0xc0   : > { %2851 = vmatmul.mubr.msk.f32.gmra.mrb[18].mxu0 %vm411_vm1, %v340_v43  ;;  %v3556_v43 = vld [vmem:[%s4578_s3] ss:$0 sm:$0xff] }
  0xc1   : > { %2853 = vmatprep.mubr.msk.f32.mxu0 %vm3159_vm0, %v4584_v0  ;;  %995 = vperm.xlu1 %3062, %v900_v42  }
  0xc2   : > { %1080 = vperm.xlu0 %3063, %v917_v44  }
  0xc3   : > { %v341_v46 = vpop.trf.xlu0 }
  0xc4   : > { %2854 = vmatmul.mubr.msk.f32.gmra.mrb[20].mxu0 %vm411_vm1, %v341_v46 }
  0xc5   : > { %2856 = vmatprep.mubr.msk.f32.mxu0 %vm3159_vm0, %v4584_v0  ;;  %1085 = vperm.xlu1 %3062, %v918_v45  }
  0xc6   : > { %1000 = vperm.xlu0 %3063, %v901_v47  }
  0xc7   : > { %v342_v49 = vpop.trf.xlu0 }
  0xc8   : > { %2857 = vmatmul.mubr.msk.f32.gmra.mrb[22].mxu0 %vm411_vm1, %v342_v49 }
  0xc9   : > { %2859 = vmatprep.mubr.msk.f32.mxu0 %vm3159_vm0, %v4584_v0  ;;  %1005 = vperm.xlu1 %3062, %v902_v48  }
  0xca   : > { %1090 = vperm.xlu0 %3063, %v919_v50  }
  0xcb   : > { %v343_v52 = vpop.trf.xlu0 }
  0xcc   : > { %2860 = vmatmul.mubr.msk.f32.gmra.mrb[24].mxu0 %vm411_vm1, %v343_v52 }
  0xcd   : > { %2862 = vmatprep.mubr.msk.f32.mxu0 %vm3159_vm0, %v4584_v0  ;;  %1100 = vperm.xlu1 %3062, %v921_v51  }
  0xce   : > { %1095 = vperm.xlu0 %3063, %v920_v53  }
  0xcf   : > { %v344_v55 = vpop.trf.xlu0 }
  0xd0   : > { %2863 = vmatmul.mubr.msk.f32.gmra.mrb[26].mxu0 %vm411_vm1, %v344_v55 }
  0xd1   : > { %2865 = vmatprep.mubr.msk.f32.mxu0 %vm3159_vm0, %v4584_v0  ;;  %1110 = vperm.xlu1 %3062, %v923_v54  }
  0xd2   : > { %1105 = vperm.xlu0 %3063, %v922_v56  }
  0xd3   : > { %v345_v58 = vpop.trf.xlu0 }
  0xd4   : > { %2866 = vmatmul.mubr.msk.f32.gmra.mrb[28].mxu0 %vm411_vm1, %v345_v58 }
  0xd5   : > { %2868 = vmatprep.mubr.msk.f32.mxu0 %vm3159_vm0, %v4584_v0  ;;  %1120 = vperm.xlu1 %3062, %v925_v57  }
  0xd6   : > { %1115 = vperm.xlu0 %3063, %v924_v60  }
  0xd7   : > { %v346_v62 = vpop.trf.xlu0 }
  0xd8   : > { %2869 = vmatmul.mubr.msk.f32.gmra.mrb[30].mxu0 %vm411_vm1, %v346_v62  ;;  %v3488_v22 = vpop.permute.xlu1 %1010 }
  0xd9   : > { %2871 = vmatprep.mubr.msk.f32.mxu0 %vm3159_vm0, %v4584_v0  ;;  %1130 = vperm.xlu1 %3062, %v927_v61  }
  0xda   : > { %1125 = vperm.xlu0 %3063, %v926_v63  }
  0xdb   : > { %v363_v2 = vpop.trf.xlu0 }
  0xdc   : > { %2872 = vmatmul.mubr.msk.f32.gmra.mrb[32].mxu0 %vm411_vm1, %v363_v2  ;;  %v3495_v24 = vpop.permute.xlu1 %1020 }
  0xdd   : > { %2874 = vmatprep.mubr.msk.f32.mxu0 %vm3159_vm0, %v4584_v0 }
  0xde   : > { %2289 = vperm.xlu0 %3063, %v2286_v3  }
  0xdf   : > { %v364_v4 = vpop.trf.xlu0 }
  0xe0   : > { %2875 = vmatmul.mubr.msk.f32.gmra.mrb[34].mxu0 %vm411_vm1, %v364_v4  ;;  %v931_v27 = vpop.permute.xlu1 %930 }
  0xe1   : > { %2877 = vmatprep.mubr.msk.f32.mxu0 %vm3159_vm0, %v4584_v0 }
  0xe3   : > { %v365_v6 = vpop.trf.xlu0 }
  0xe4   : > { %2878 = vmatmul.mubr.msk.f32.gmra.mrb[36].mxu0 %vm411_vm1, %v365_v6  ;;  %v936_v29 = vpop.permute.xlu1 %935 }
  0xe5   : > { %2880 = vmatprep.mubr.msk.f32.mxu0 %vm3159_vm0, %v4584_v0 }
  0xe7   : > { %v366_v8 = vpop.trf.xlu0 }
  0xe8   : > { %2881 = vmatmul.mubr.msk.f32.gmra.mrb[38].mxu0 %vm411_vm1, %v366_v8  ;;  %v941_v30 = vpop.permute.xlu1 %940 }
  0xe9   : > { %2883 = vmatprep.mubr.msk.f32.mxu0 %vm3159_vm0, %v4584_v0 }
  0xeb   : > { %v367_v9 = vpop.trf.xlu0 }
  0xec   : > { %2884 = vmatmul.mubr.msk.f32.gmra.mrb[40].mxu0 %vm411_vm1, %v367_v9  ;;  %v3517_v31 = vpop.permute.xlu1 %1025 }
  0xed   : > { %2886 = vmatprep.mubr.msk.f32.mxu0 %vm3159_vm0, %v4584_v0 }
  0xef   : > { %v368_v11 = vpop.trf.xlu0 }
  0xf0   : > { %2887 = vmatmul.mubr.msk.f32.gmra.mrb[42].mxu0 %vm411_vm1, %v368_v11  ;;  %v3523_v32 = vpop.permute.xlu1 %1030  ;;  %v3577_v11 = vld [vmem:[%s4579_s4 + $0x1] ss:$0 sm:$0xff] }
  0xf1   : > { %2889 = vmatprep.mubr.msk.f32.mxu0 %vm3159_vm0, %v4584_v0 }
  0xf3   : > { %v369_v13 = vpop.trf.xlu0 }
  0xf4   : > { %2890 = vmatmul.mubr.msk.f32.gmra.mrb[44].mxu0 %vm411_vm1, %v369_v13  ;;  %v946_v33 = vpop.permute.xlu1 %945 }
  0xf7   : > { %v370_v14 = vpop.trf.xlu0 }
  0xf8   : > { %2893 = vmatmul.mubr.msk.f32.vlgmr.msra.gmra.mrb[0].mxu1 %vm411_vm1, %v370_v14  ;;  %v951_v34 = vpop.permute.xlu1 %950 }
  0xf9   : > { %2895 = vmatprep.mubr.msk.f32.mxu1 %vm3159_vm0, %v4584_v0 }
  0xfb   : > { %v371_v16 = vpop.trf.xlu0 }
  0xfc   : > { %2896 = vmatmul.mubr.msk.f32.gmra.mrb[2].mxu1 %vm411_vm1, %v371_v16  ;;  %v3537_v35 = vpop.permute.xlu1 %1035 }
  0xfd   : > { %2898 = vmatprep.mubr.msk.f32.mxu1 %vm3159_vm0, %v4584_v0 }
  0xff   : > { %v372_v18 = vpop.trf.xlu0 }
 0x100   : > { %2899 = vmatmul.mubr.msk.f32.gmra.mrb[4].mxu1 %vm411_vm1, %v372_v18  ;;  %v3539_v36 = vpop.permute.xlu1 %1040 }
 0x101   : > { %2901 = vmatprep.mubr.msk.f32.mxu1 %vm3159_vm0, %v4584_v0 }
 0x103   : > { %v373_v19 = vpop.trf.xlu0 }
 0x104   : > { %2902 = vmatmul.mubr.msk.f32.gmra.mrb[6].mxu1 %vm411_vm1, %v373_v19  ;;  %v3541_v37 = vpop.permute.xlu1 %955 }
 0x105   : > { %2904 = vmatprep.mubr.msk.f32.mxu1 %vm3159_vm0, %v4584_v0 }
 0x107   : > { %v374_v21 = vpop.trf.xlu0 }
 0x108   : > { %2905 = vmatmul.mubr.msk.f32.gmra.mrb[8].mxu1 %vm411_vm1, %v374_v21  ;;  %v3543_v38 = vpop.permute.xlu1 %960 }
 0x109   : > { %2907 = vmatprep.mubr.msk.f32.mxu1 %vm3159_vm0, %v4584_v0 }
 0x10b   : > { %v375_v23 = vpop.trf.xlu0 }
 0x10c   : > { %2908 = vmatmul.mubr.msk.f32.gmra.mrb[10].mxu1 %vm411_vm1, %v375_v23  ;;  %v3545_v39 = vpop.permute.xlu1 %1045 }
 0x10d   : > { %2910 = vmatprep.mubr.msk.f32.mxu1 %vm3159_vm0, %v4584_v0 }
 0x10f   : > { %v376_v25 = vpop.trf.xlu0 }
 0x110   : > { %2911 = vmatmul.mubr.msk.f32.gmra.mrb[12].mxu1 %vm411_vm1, %v376_v25  ;;  %v3547_v40 = vpop.permute.xlu1 %1050 }
 0x111   : > { %2913 = vmatprep.mubr.msk.f32.mxu1 %vm3159_vm0, %v4584_v0 }
 0x113   : > { %v377_v26 = vpop.trf.xlu0 }
 0x114   : > { %2914 = vmatmul.mubr.msk.f32.gmra.mrb[14].mxu1 %vm411_vm1, %v377_v26  ;;  %v3549_v41 = vpop.permute.xlu1 %965 }
 0x115   : > { %2916 = vmatprep.mubr.msk.f32.mxu1 %vm3159_vm0, %v4584_v0 }
 0x117   : > { %v378_v28 = vpop.trf.xlu0 }
 0x118   : > { %2917 = vmatmul.mubr.msk.f32.gmra.mrb[16].mxu1 %vm411_vm1, %v378_v28  ;;  %v3551_v42 = vpop.permute.xlu1 %970 }
 0x119   : > { %2919 = vmatprep.mubr.msk.f32.mxu1 %vm3159_vm0, %v4584_v0 }
 0x11c   : > { %2920 = vmatmul.mubr.msk.f32.gmra.mrb[18].mxu1 %vm411_vm1, %v3432_v59  ;;  %v3558_v44 = vpop.permute.xlu1 %1055 }
 0x11d   : > { %2922 = vmatprep.mubr.msk.f32.mxu1 %vm3159_vm0, %v4584_v0 }
 0x120   : > { %2923 = vmatmul.mubr.msk.f32.gmra.mrb[20].mxu1 %vm411_vm1, %v3449_v1  ;;  %v3562_v53 = vpop.permute.xlu1 %1060 }
 0x121   : > { %2925 = vmatprep.mubr.msk.f32.mxu1 %vm3159_vm0, %v4584_v0 }
 0x124   : > { %2926 = vmatmul.mubr.msk.f32.gmra.mrb[22].mxu1 %vm411_vm1, %v397_v5  ;;  %v3566_v62 = vpop.permute.xlu1 %975 }
 0x125   : > { %2928 = vmatprep.mubr.msk.f32.mxu1 %vm3159_vm0, %v4584_v0 }
 0x128   : > { %2929 = vmatmul.mubr.msk.f32.gmra.mrb[24].mxu1 %vm411_vm1, %v398_v7 }
 0x129   : > { %2931 = vmatprep.mubr.msk.f32.mxu1 %vm3159_vm0, %v4584_v0 }
 0x12c   : > { %2932 = vmatmul.mubr.msk.f32.gmra.mrb[26].mxu1 %vm411_vm1, %v399_v10  ;;  %v3572_v10 = vpop.permute.xlu1 %980 }
 0x12d   : > { %2934 = vmatprep.mubr.msk.f32.mxu1 %vm3159_vm0, %v4584_v0 }
 0x130   : > { %2935 = vmatmul.mubr.msk.f32.gmra.mrb[28].mxu1 %vm411_vm1, %v400_v12  ;;  %v3588_v28 = vpop.permute.xlu1 %1065 }
 0x131   : > { %2937 = vmatprep.mubr.msk.f32.mxu1 %vm3159_vm0, %v4584_v0 }
 0x134   : > { %2938 = vmatmul.mubr.msk.f32.gmra.mrb[30].mxu1 %vm411_vm1, %v401_v15  ;;  %v3582_v15 = vld [vmem:[%s4579_s4] ss:$0 sm:$0xff] }
 0x135   : > { %2940 = vmatprep.mubr.msk.f32.mxu1 %vm3159_vm0, %v4584_v0 }
 0x138   : > { %2941 = vmatmul.mubr.msk.f32.gmra.mrb[32].mxu1 %vm411_vm1, %v402_v17 }
 0x139   : > { %2943 = vmatprep.mubr.msk.f32.mxu1 %vm3159_vm0, %v4584_v0 }
 0x13c   : > { %2944 = vmatmul.mubr.msk.f32.gmra.mrb[34].mxu1 %vm411_vm1, %v403_v20 }
 0x16f   : > { %v601_v45 = vpop.f32.mrb[0].mxu0 }
 0x170   : > { %v602_v46 = vadd.f32 %v3556_v43, %v601_v45  ;;  %v2825_v47 = vpop.f32.mrb[1].mxu0 }
 0x172   : > { %v805_v48 = vmax.f32 %v602_v46, 0.0 }
 0x173   : > { %v606_v49 = vpop.f32.mrb[2].mxu0 }
 0x174   : > { %v846_v50 = vmin.f32 %v805_v48, 6.0  ;;  %v607_v51 = vadd.f32 %v3556_v43, %v606_v49  ;;  %v2828_v52 = vpop.f32.mrb[3].mxu0 }
 0x176   : > { %v1133_v54 = vmul.f32 %v931_v27, %v846_v50  ;;  %v806_v55 = vmax.f32 %v607_v51, 0.0  ;;  %v3601_v50 = vld [vmem:[%s4579_s4 + $0x3] ss:$0 sm:$0xff] }
 0x177   : > { %v611_v56 = vpop.f32.mrb[4].mxu0 }
 0x178   : > { %1175 = vst.msk [vmem:[#allocation2] sm:$0xff] %vm1174_vm2, %v1133_v54  ;;  %v847_v57 = vmin.f32 %v806_v55, 6.0  ;;  %v612_v58 = vadd.f32 %v3556_v43, %v611_v56  ;;  %v2831_v59 = vpop.f32.mrb[5].mxu0 }
 0x17a   : > { %v1134_v60 = vmul.f32 %v936_v29, %v847_v57  ;;  %v807_v61 = vmax.f32 %v612_v58, 0.0  ;;  %v3609_v58 = vld [vmem:[%s4579_s4 + $0x4] ss:$0 sm:$0xff] }
 0x17b   : > { %v616_v63 = vpop.f32.mrb[6].mxu0 }
 0x17c   : > { %1176 = vst.msk [vmem:[#allocation2 + $0x8] sm:$0xff] %vm1174_vm2, %v1134_v60  ;;  %v848_v1 = vmin.f32 %v807_v61, 6.0  ;;  %v617_v2 = vadd.f32 %v3556_v43, %v616_v63  ;;  %v2834_v3 = vpop.f32.mrb[7].mxu0 }
 0x17e   : > { %v1135_v4 = vmul.f32 %v941_v30, %v848_v1  ;;  %v808_v5 = vmax.f32 %v617_v2, 0.0  ;;  %v3593_v30 = vld [vmem:[%s4579_s4 + $0x2] ss:$0 sm:$0xff] }
 0x17f   : > { %v621_v6 = vpop.f32.mrb[8].mxu0  ;;  %v1221_v16 = vld [vmem:[#allocation2] sm:$0xff] }
 0x180   : > { %1177 = vst.msk [vmem:[#allocation2 + $0x10] sm:$0xff] %vm1174_vm2, %v1135_v4  ;;  %v849_v7 = vmin.f32 %v808_v5, 6.0  ;;  %v622_v8 = vadd.f32 %v3556_v43, %v621_v6  ;;  %v2837_v9 = vpop.f32.mrb[9].mxu0  ;;  %v1262_v27 = vmul.f32 %v3582_v15, %v1221_v16  ;;  %v3614_v6 = vpop.permute.xlu1 %1070 }
 0x182   : > { %v1136_v12 = vmul.f32 %v946_v33, %v849_v7  ;;  %v809_v13 = vmax.f32 %v622_v8, 0.0  ;;  %v3619_v7 = vld [vmem:[%s4579_s4 + $0x5] ss:$0 sm:$0xff] }
 0x183   : > { %v626_v14 = vpop.f32.mrb[10].mxu0  ;;  %v1334_v17 = vld [vmem:[#allocation2 + $0x1] sm:$0xff] }
 0x184   : > { %1178 = vst.msk [vmem:[#allocation2 + $0x18] sm:$0xff] %vm1174_vm2, %v1136_v12  ;;  %v850_v18 = vmin.f32 %v809_v13, 6.0  ;;  %v627_v19 = vadd.f32 %v3556_v43, %v626_v14  ;;  %v2840_v20 = vpop.f32.mrb[11].mxu0  ;;  %v1375_v21 = vmul.f32 %v3577_v11, %v1334_v17  ;;  %v1222_v26 = vld [vmem:[#allocation2 + $0x8] sm:$0xff] }
 0x185   : > { %v1447_v45 = vld [vmem:[#allocation2 + $0x2] sm:$0xff]  ;;  %v1263_v51 = vmul.f32 %v3582_v15, %v1222_v26 }
 0x186   : > { %v1137_v23 = vmul.f32 %v951_v34, %v850_v18  ;;  %v810_v25 = vmax.f32 %v627_v19, 0.0  ;;  %v1411_v49 = vadd.f32 %v1375_v21, %v1262_v27  ;;  %v1488_v56 = vmul.f32 %v3593_v30, %v1447_v45 }
 0x187   : > { %v631_v29 = vpop.f32.mrb[12].mxu0  ;;  %v1335_v33 = vld [vmem:[#allocation2 + $0x9] sm:$0xff] }
 0x188   : > { %1179 = vst.msk [vmem:[#allocation2 + $0x20] sm:$0xff] %vm1174_vm2, %v1137_v23  ;;  %v851_v46 = vmin.f32 %v810_v25, 6.0  ;;  %v632_v47 = vadd.f32 %v3556_v43, %v631_v29  ;;  %v2843_v34 = vpop.f32.mrb[13].mxu0  ;;  %v1376_v48 = vmul.f32 %v3577_v11, %v1335_v33  ;;  %v1448_v55 = vld [vmem:[#allocation2 + $0xa] sm:$0xff]  ;;  %v1524_v2 = vadd.f32 %v1488_v56, %v1411_v49 }
 0x189   : > { %v1223_v4 = vld [vmem:[#allocation2 + $0x10] sm:$0xff]  ;;  %v1489_v8 = vmul.f32 %v3593_v30, %v1448_v55 }
 0x18a   : > { %v1138_v52 = vmul.f32 %v3541_v37, %v851_v46  ;;  %v811_v54 = vmax.f32 %v632_v47, 0.0  ;;  %v1412_v59 = vadd.f32 %v1376_v48, %v1263_v51  ;;  %v1264_v25 = vmul.f32 %v3582_v15, %v1223_v4  ;;  %v3633_v47 = vld [vmem:[%s4579_s4 + $0x6] ss:$0 sm:$0xff] }
 0x18b   : > { %v636_v57 = vpop.f32.mrb[14].mxu0  ;;  %v1449_v60 = vld [vmem:[#allocation2 + $0x12] sm:$0xff] }
 0x18c   : > { %1180 = vst.msk [vmem:[#allocation2 + $0x28] sm:$0xff] %vm1174_vm2, %v1138_v52  ;;  %v852_v61 = vmin.f32 %v811_v54, 6.0  ;;  %v637_v63 = vadd.f32 %v3556_v43, %v636_v57  ;;  %v2846_v1 = vpop.f32.mrb[15].mxu0  ;;  %v1567_v37 = vmul.f32 %v3601_v50, %v1449_v60  ;;  %v1639_v3 = vld [vmem:[#allocation2 + $0x13] sm:$0xff]  ;;  %v1525_v20 = vadd.f32 %v1489_v8, %v1412_v59  ;;  %v3639_v59 = vpop.permute.xlu1 %985 }
 0x18d   : > { %v1336_v5 = vld [vmem:[#allocation2 + $0x11] sm:$0xff]  ;;  %v1680_v23 = vmul.f32 %v3609_v58, %v1639_v3 }
 0x18e   : > { %v1752_v9 = vld [vmem:[#allocation2 + $0x14] sm:$0xff]  ;;  %v1377_v12 = vmul.f32 %v3577_v11, %v1336_v5  ;;  %v1139_v13 = vmul.f32 %v3543_v38, %v852_v61  ;;  %v812_v14 = vmax.f32 %v637_v63, 0.0  ;;  %v1603_v16 = vadd.f32 %v1567_v37, %v1524_v2  ;;  %v3644_v63 = vld [vmem:[%s4579_s4 + $0x7] ss:$0 sm:$0xff] }
 0x18f   : > { %v1224_v17 = vld [vmem:[#allocation2 + $0x18] sm:$0xff]  ;;  %v641_v18 = vpop.f32.mrb[16].mxu0  ;;  %v1793_v45 = vmul.f32 %v3619_v7, %v1752_v9  ;;  %v1225_v57 = vld [vmem:[#allocation2 + $0x20] sm:$0xff] }
 0x190   : > { %v1450_v19 = vld [vmem:[#allocation2 + $0x1a] sm:$0xff]  ;;  %1181 = vst.msk [vmem:[#allocation2 + $0x30] sm:$0xff] %vm1174_vm2, %v1139_v13  ;;  %v853_v26 = vmin.f32 %v812_v14, 6.0  ;;  %v642_v27 = vadd.f32 %v3556_v43, %v641_v18  ;;  %v2849_v29 = vpop.f32.mrb[17].mxu0  ;;  %v1716_v34 = vadd.f32 %v1680_v23, %v1603_v16  ;;  %v1265_v48 = vmul.f32 %v3582_v15, %v1224_v17 }
 0x191   : > { %v1640_v21 = vld [vmem:[#allocation2 + $0x1b] sm:$0xff]  ;;  %v1568_v33 = vmul.f32 %v3601_v50, %v1450_v19  ;;  %v1413_v51 = vadd.f32 %v1377_v12, %v1264_v25  ;;  %v3653_v12 = vld [vmem:[%s4579_s4 + $0x8] ss:$0 sm:$0xff]  ;;  %v1491_v18 = vmul.f32 %v3593_v30, %v1450_v19  ;;  %v3662_v23 = vmul.f32 %v3582_v15, %v1225_v57 }
 0x192   : > { %v1753_v38 = vld [vmem:[#allocation2 + $0x1c] sm:$0xff]  ;;  %v1140_v52 = vmul.f32 %v3549_v41, %v853_v26  ;;  %v813_v54 = vmax.f32 %v642_v27, 0.0  ;;  %v1681_v56 = vmul.f32 %v3609_v58, %v1640_v21  ;;  %v1829_v37 = vadd.f32 %v1793_v45, %v1716_v34 }
 0x193   : > { %v1337_v46 = vld [vmem:[#allocation2 + $0x19] sm:$0xff]  ;;  %v1604_v55 = vadd.f32 %v1568_v33, %v1525_v20  ;;  %v646_v61 = vpop.f32.mrb[18].mxu0  ;;  %v1754_v1 = vld [vmem:[#allocation2 + $0x24] sm:$0xff]  ;;  %v1794_v2 = vmul.f32 %v3619_v7, %v1753_v38  ;;  %v1490_v41 = vmul.f32 %v3593_v30, %v1449_v60 }
 0x194   : > { %v1378_v49 = vmul.f32 %v3577_v11, %v1337_v46  ;;  %v1944_v3 = vld [vmem:[#allocation2 + $0x25] sm:$0xff]  ;;  %1182 = vst.msk [vmem:[#allocation2 + $0x38] sm:$0xff] %vm1174_vm2, %v1140_v52  ;;  %v854_v5 = vmin.f32 %v813_v54, 6.0  ;;  %v647_v8 = vadd.f32 %v3556_v43, %v646_v61  ;;  %v2852_v9 = vpop.f32.mrb[19].mxu0  ;;  %v1872_v14 = vmul.f32 %v3633_v47, %v1754_v1  ;;  %v3673_v61 = vpop.permute.xlu1 %990 }
 0x195   : > { %v1717_v13 = vadd.f32 %v1681_v56, %v1604_v55  ;;  %v2057_v16 = vld [vmem:[#allocation2 + $0x26] sm:$0xff]  ;;  %v1526_v60 = vadd.f32 %v1490_v41, %v1413_v51  ;;  %v1985_v29 = vmul.f32 %v3644_v63, %v1944_v3  ;;  %v1795_v41 = vmul.f32 %v3619_v7, %v1754_v1  ;;  %v3683_v9 = vld [vmem:[%s4580_s5] ss:$0 sm:$0xff] }
 0x196   : > { %v1414_v4 = vadd.f32 %v1378_v49, %v1265_v48  ;;  %v3656_v17 = vld [vmem:[#allocation2 + $0x22] sm:$0xff]  ;;  %v1141_v25 = vmul.f32 %v3551_v42, %v854_v5  ;;  %v814_v26 = vmax.f32 %v647_v8, 0.0  ;;  %v1908_v27 = vadd.f32 %v1872_v14, %v1829_v37 }
 0x197   : > { %v1569_v20 = vmul.f32 %v3601_v50, %v3656_v17  ;;  %v1641_v21 = vld [vmem:[#allocation2 + $0x23] sm:$0xff]  ;;  %v651_v33 = vpop.f32.mrb[20].mxu0  ;;  %v1755_v38 = vld [vmem:[#allocation2 + $0x2c] sm:$0xff]  ;;  %v1830_v45 = vadd.f32 %v1794_v2, %v1717_v13  ;;  %v2098_v19 = vmul.f32 %v3653_v12, %v2057_v16 }
 0x198   : > { %v1945_v46 = vld [vmem:[#allocation2 + $0x2d] sm:$0xff]  ;;  %v1527_v34 = vadd.f32 %v1491_v18, %v1414_v4  ;;  %1183 = vst.msk [vmem:[#allocation2 + $0x40] sm:$0xff] %vm1174_vm2, %v1141_v25  ;;  %v855_v49 = vmin.f32 %v814_v26, 6.0  ;;  %v652_v51 = vadd.f32 %v3556_v43, %v651_v33  ;;  %v2855_v52 = vpop.f32.mrb[21].mxu0  ;;  %v1873_v42 = vmul.f32 %v3633_v47, %v1755_v38 }
 0x199   : > { %v1605_v48 = vadd.f32 %v1569_v20, %v1526_v60  ;;  %v3670_v54 = vld [vmem:[#allocation2 + $0x2a] sm:$0xff]  ;;  %v1682_v56 = vmul.f32 %v3609_v58, %v1641_v21  ;;  %v1986_v2 = vmul.f32 %v3644_v63, %v1945_v46  ;;  %v2021_v37 = vadd.f32 %v1985_v29, %v1908_v27 }
 0x19a   : > { %v1642_v55 = vld [vmem:[#allocation2 + $0x2b] sm:$0xff]  ;;  %v1570_v4 = vmul.f32 %v3601_v50, %v3670_v54  ;;  %v1142_v5 = vmul.f32 %v3566_v62, %v855_v49  ;;  %v815_v8 = vmax.f32 %v652_v51, 0.0  ;;  %v1909_v13 = vadd.f32 %v1873_v42, %v1830_v45  ;;  %v1338_v45 = vld [vmem:[#allocation2 + $0x21] sm:$0xff] }
 0x19b   : > { %v1226_v57 = vld [vmem:[#allocation2 + $0x28] sm:$0xff]  ;;  %v1718_v14 = vadd.f32 %v1682_v56, %v1605_v48  ;;  %v656_v16 = vpop.f32.mrb[22].mxu0  ;;  %v2134_v18 = vadd.f32 %v2098_v19, %v2021_v37  ;;  %v1683_v20 = vmul.f32 %v3609_v58, %v1642_v55  ;;  %v3686_v21 = vld [vmem:[#allocation2 + $0x34] sm:$0xff]  ;;  %v1796_v55 = vmul.f32 %v3619_v7, %v1755_v38 }
 0x19c   : > { %v2058_v3 = vld [vmem:[#allocation2 + $0x2e] sm:$0xff]  ;;  %v1606_v60 = vadd.f32 %v1570_v4, %v1527_v34  ;;  %v1267_v25 = vmul.f32 %v3582_v15, %v1226_v57  ;;  %1184 = vst.msk [vmem:[#allocation2 + $0x48] sm:$0xff] %vm1174_vm2, %v1142_v5  ;;  %v856_v62 = vmin.f32 %v815_v8, 6.0  ;;  %v657_v1 = vadd.f32 %v3556_v43, %v656_v16  ;;  %v2858_v26 = vpop.f32.mrb[23].mxu0  ;;  %v2059_v56 = vld [vmem:[#allocation2 + $0x36] sm:$0xff]  ;;  %v3697_v57 = vpop.permute.xlu1 %1075 }
 0x19d   : > { %v2022_v27 = vadd.f32 %v1986_v2, %v1909_v13  ;;  %v2099_v29 = vmul.f32 %v3653_v12, %v2058_v3  ;;  %v1946_v33 = vld [vmem:[#allocation2 + $0x35] sm:$0xff]  ;;  %v1339_v46 = vld [vmem:[#allocation2 + $0x29] sm:$0xff]  ;;  %v2177_v19 = vadd.f32 %v3683_v9, %v2134_v18  ;;  %v1831_v48 = vadd.f32 %v1795_v41, %v1718_v14 }
 0x19e   : > { %v1719_v34 = vadd.f32 %v1683_v20, %v1606_v60  ;;  %v1874_v49 = vmul.f32 %v3633_v47, %v3686_v21  ;;  %v1143_v51 = vmul.f32 %v3572_v10, %v856_v62  ;;  %v816_v52 = vmax.f32 %v657_v1, 0.0  ;;  %v3708_v60 = vpop.permute.xlu0 %1015 }
 0x19f   : > { %v2135_v42 = vadd.f32 %v2099_v29, %v2022_v27  ;;  %v661_v2 = vpop.f32.mrb[24].mxu0  ;;  %v3699_v37 = vld [vmem:[#allocation2 + $0x3c] sm:$0xff]  ;;  %v1987_v5 = vmul.f32 %v3644_v63, %v1946_v33  ;;  %v1379_v41 = vmul.f32 %v3577_v11, %v1338_v45  ;;  %v1380_v8 = vmul.f32 %v3577_v11, %v1339_v46  ;;  %v3714_v46 = vld [vmem:[#allocation2 + $0x32] sm:$0xff] }
 0x1a0   : > { %v1910_v3 = vadd.f32 %v1874_v49, %v1831_v48  ;;  %v1947_v4 = vld [vmem:[#allocation2 + $0x3d] sm:$0xff]  ;;  %1185 = vst.msk [vmem:[#allocation2 + $0x50] sm:$0xff] %vm1174_vm2, %v1143_v51  ;;  %v857_v10 = vmin.f32 %v816_v52, 6.0  ;;  %v662_v13 = vadd.f32 %v3556_v43, %v661_v2  ;;  %v2861_v38 = vpop.f32.mrb[25].mxu0  ;;  %v1832_v14 = vadd.f32 %v1796_v55, %v1719_v34 }
 0x1a1   : > { %v1875_v16 = vmul.f32 %v3633_v47, %v3699_v37  ;;  %v2060_v18 = vld [vmem:[#allocation2 + $0x3e] sm:$0xff]  ;;  %v2178_v20 = vadd.f32 %v3683_v9, %v2135_v42  ;;  %v2213_v62 = vmax.f32 %v2177_v19, 0.0  ;;  %v2100_v26 = vmul.f32 %v3653_v12, %v2059_v56 }
 0x1a2   : > { %v2023_v1 = vadd.f32 %v1987_v5, %v1910_v3  ;;  %v1144_v27 = vmul.f32 %v3639_v59, %v857_v10  ;;  %v817_v29 = vmax.f32 %v662_v13, 0.0  ;;  %v1988_v45 = vmul.f32 %v3644_v63, %v1947_v4  ;;  %v3722_v2 = vld [vmem:[#allocation2 + $0x3a] sm:$0xff]  ;;  %v996_v3 = vpop.permute.xlu1 %995 }
 0x1a3   : > { %v1911_v33 = vadd.f32 %v1875_v16, %v1832_v14  ;;  %v666_v34 = vpop.f32.mrb[26].mxu0  ;;  %v2101_v48 = vmul.f32 %v3653_v12, %v2060_v18  ;;  %v1415_v49 = vadd.f32 %v1379_v41, %v3662_v23  ;;  %v1416_v51 = vadd.f32 %v1380_v8, %v1267_v25  ;;  %v1644_v13 = vld [vmem:[#allocation2 + $0x3b] sm:$0xff]  ;;  %v3729_v14 = vpop.permute.xlu0 %1080 }
 0x1a4   : > { %v1492_v19 = vmul.f32 %v3593_v30, %v3656_v17  ;;  %1186 = vst.msk [vmem:[#allocation2 + $0x58] sm:$0xff] %vm1174_vm2, %v1144_v27  ;;  %v858_v52 = vmin.f32 %v817_v29, 6.0  ;;  %v667_v59 = vadd.f32 %v3556_v43, %v666_v34  ;;  %v2864_v42 = vpop.f32.mrb[27].mxu0  ;;  %v2136_v56 = vadd.f32 %v2100_v26, %v2023_v1  ;;  %v1643_v17 = vld [vmem:[#allocation2 + $0x33] sm:$0xff] }
 0x1a5   : > { %v2024_v55 = vadd.f32 %v1988_v45, %v1911_v33  ;;  %v2214_v4 = vmax.f32 %v2178_v20, 0.0  ;;  %v1493_v5 = vmul.f32 %v3593_v30, %v3670_v54  ;;  %v1571_v25 = vmul.f32 %v3601_v50, %v3714_v46  ;;  %v3741_v33 = vld [vmem:[#allocation2 + $0x44] sm:$0xff] }
 0x1a6   : > { %v1528_v23 = vadd.f32 %v1492_v19, %v1415_v49  ;;  %v1145_v41 = vmul.f32 %v3673_v61, %v858_v52  ;;  %v818_v8 = vmax.f32 %v667_v59, 0.0  ;;  %v3731_v16 = vmin.f32 %v2213_v62, 6.0  ;;  %v1948_v42 = vld [vmem:[#allocation2 + $0x45] sm:$0xff] }
 0x1a7   : > { %v2137_v10 = vadd.f32 %v2101_v48, %v2024_v55  ;;  %v671_v38 = vpop.f32.mrb[28].mxu0  ;;  %v1529_v18 = vadd.f32 %v1493_v5, %v1416_v51  ;;  %v1572_v20 = vmul.f32 %v3601_v50, %v3722_v2  ;;  %v3738_v61 = vadd.f32 %v3683_v9, %v2136_v56  ;;  %v3743_v62 = vld [vmem:[#allocation2 + $0x4c] sm:$0xff]  ;;  %v3753_v56 = vpop.permute.xlu1 %1085 }
 0x1a8   : > { %v1607_v54 = vadd.f32 %v1571_v25, %v1528_v23  ;;  %1187 = vst.msk [vmem:[#allocation2 + $0x60] sm:$0xff] %vm1174_vm2, %v1145_v41  ;;  %v859_v1 = vmin.f32 %v818_v8, 6.0  ;;  %v672_v26 = vadd.f32 %v3556_v43, %v671_v38  ;;  %v2867_v27 = vpop.f32.mrb[29].mxu0  ;;  %v1684_v29 = vmul.f32 %v3609_v58, %v1643_v17  ;;  %v1949_v55 = vld [vmem:[#allocation2 + $0x4d] sm:$0xff] }
 0x1a9   : > { %v3745_v45 = vmin.f32 %v2214_v4, 6.0  ;;  %v3748_v34 = vadd.f32 %v3683_v9, %v2137_v10  ;;  %v1608_v48 = vadd.f32 %v1572_v20, %v1529_v18  ;;  %v1685_v49 = vmul.f32 %v3609_v58, %v1644_v13  ;;  %v2061_v17 = vld [vmem:[#allocation2 + $0x46] sm:$0xff]  ;;  %v2062_v38 = vld [vmem:[#allocation2 + $0x4e] sm:$0xff]  ;;  %v1228_v20 = vld [vmem:[#allocation2 + $0x38] sm:$0xff] }
 0x1aa   : > { %v1146_v51 = vmul.f32 %v996_v3, %v859_v1  ;;  %v819_v19 = vmax.f32 %v672_v26, 0.0  ;;  %v1720_v52 = vadd.f32 %v1684_v29, %v1607_v54  ;;  %v1797_v59 = vmul.f32 %v3619_v7, %v3686_v21  ;;  %v1227_v18 = vld [vmem:[#allocation2 + $0x30] sm:$0xff] }
 0x1ab   : > { %v676_v5 = vpop.f32.mrb[30].mxu0  ;;  %v1721_v23 = vadd.f32 %v1685_v49, %v1608_v48  ;;  %v1798_v4 = vmul.f32 %v3619_v7, %v3699_v37  ;;  %v1876_v25 = vmul.f32 %v3633_v47, %v3741_v33  ;;  %v1877_v3 = vmul.f32 %v3633_v47, %v3743_v62  ;;  %v1001_v37 = vpop.permute.xlu0 %1000  ;;  %v1340_v29 = vld [vmem:[#allocation2 + $0x31] sm:$0xff] }
 0x1ac   : > { %1188 = vst.msk [vmem:[#allocation2 + $0x68] sm:$0xff] %vm1174_vm2, %v1146_v51  ;;  %v860_v41 = vmin.f32 %v819_v19, 6.0  ;;  %v677_v21 = vadd.f32 %v3556_v43, %v676_v5  ;;  %v2870_v8 = vpop.f32.mrb[31].mxu0  ;;  %v2215_v10 = vmax.f32 %v3738_v61, 0.0  ;;  %v1833_v13 = vadd.f32 %v1797_v59, %v1720_v52  ;;  %v1341_v5 = vld [vmem:[#allocation2 + $0x39] sm:$0xff] }
 0x1ad   : > { %v2216_v54 = vmax.f32 %v3748_v34, 0.0  ;;  %v1834_v1 = vadd.f32 %v1798_v4, %v1721_v23  ;;  %v1989_v26 = vmul.f32 %v3644_v63, %v1948_v42  ;;  %v1990_v27 = vmul.f32 %v3644_v63, %v1949_v55 }
 0x1ae   : > { %v820_v48 = vmax.f32 %v677_v21, 0.0  ;;  %v1147_v49 = vmul.f32 %v1001_v37, %v860_v41  ;;  %v1912_v51 = vadd.f32 %v1876_v25, %v1833_v13  ;;  %v2102_v19 = vmul.f32 %v3653_v12, %v2061_v17  ;;  %v3774_v41 = vld [vmem:[#allocation2 + $0x42] sm:$0xff]  ;;  %v3776_v17 = vld [vmem:[#allocation2 + $0x4a] sm:$0xff] }
 0x1af   : > { %v681_v61 = vpop.f32.mrb[32].mxu0  ;;  %v1913_v52 = vadd.f32 %v1877_v3, %v1834_v1  ;;  %v2103_v59 = vmul.f32 %v3653_v12, %v2062_v38  ;;  %v1268_v8 = vmul.f32 %v3582_v15, %v1227_v18  ;;  %v1269_v34 = vmul.f32 %v3582_v15, %v1228_v20  ;;  %v1006_v3 = vpop.permute.xlu1 %1005 }
 0x1b0   : > { %v861_v23 = vmin.f32 %v820_v48, 6.0  ;;  %1189 = vst.msk [vmem:[#allocation2 + $0x70] sm:$0xff] %vm1174_vm2, %v1147_v49  ;;  %v682_v42 = vadd.f32 %v3556_v43, %v681_v61  ;;  %v2873_v55 = vpop.f32.mrb[33].mxu0  ;;  %v2025_v4 = vadd.f32 %v1989_v26, %v1912_v51  ;;  %v1381_v25 = vmul.f32 %v3577_v11, %v1340_v29 }
 0x1b1   : > { %v2026_v21 = vadd.f32 %v1990_v27, %v1913_v52  ;;  %v1382_v13 = vmul.f32 %v3577_v11, %v1341_v5  ;;  %v1494_v38 = vmul.f32 %v3593_v30, %v3714_v46  ;;  %v1495_v18 = vmul.f32 %v3593_v30, %v3722_v2  ;;  %v1645_v5 = vld [vmem:[#allocation2 + $0x43] sm:$0xff] }
 0x1b2   : > { %v1148_v20 = vmul.f32 %v1006_v3, %v861_v23  ;;  %v821_v37 = vmax.f32 %v682_v42, 0.0  ;;  %v2138_v1 = vadd.f32 %v2102_v19, %v2025_v4  ;;  %v1417_v26 = vadd.f32 %v1381_v25, %v1268_v8  ;;  %v1646_v8 = vld [vmem:[#allocation2 + $0x4b] sm:$0xff] }
 0x1b3   : > { %v686_v48 = vpop.f32.mrb[34].mxu0  ;;  %v2139_v29 = vadd.f32 %v2103_v59, %v2026_v21  ;;  %v1418_v49 = vadd.f32 %v1382_v13, %v1269_v34  ;;  %v1573_v51 = vmul.f32 %v3601_v50, %v3774_v41  ;;  %v1574_v27 = vmul.f32 %v3601_v50, %v3776_v17  ;;  %v3798_v21 = vld [vmem:[#allocation2 + $0x54] sm:$0xff]  ;;  %v3800_v13 = vld [vmem:[#allocation2 + $0x5c] sm:$0xff] }
 0x1b4   : > { %1190 = vst.msk [vmem:[#allocation2 + $0x78] sm:$0xff] %vm1174_vm2, %v1148_v20  ;;  %v862_v46 = vmin.f32 %v821_v37, 6.0  ;;  %v687_v61 = vadd.f32 %v3556_v43, %v686_v48  ;;  %v2876_v2 = vpop.f32.mrb[35].mxu0  ;;  %v1530_v52 = vadd.f32 %v1494_v38, %v1417_v26  ;;  %v3791_v59 = vmin.f32 %v2215_v10, 6.0 }
 0x1b5   : > { %v3793_v34 = vmin.f32 %v2216_v54, 6.0  ;;  %v2182_v23 = vadd.f32 %v3683_v9, %v2139_v29  ;;  %v1531_v42 = vadd.f32 %v1495_v18, %v1418_v49  ;;  %v1686_v3 = vmul.f32 %v3609_v58, %v1645_v5  ;;  %v1950_v49 = vld [vmem:[#allocation2 + $0x55] sm:$0xff] }
 0x1b6   : > { %v1149_v55 = vmul.f32 %v3488_v22, %v862_v46  ;;  %v822_v4 = vmax.f32 %v687_v61, 0.0  ;;  %v1609_v25 = vadd.f32 %v1573_v51, %v1530_v52  ;;  %v2181_v38 = vadd.f32 %v3683_v9, %v2138_v1  ;;  %v1951_v46 = vld [vmem:[#allocation2 + $0x5d] sm:$0xff] }
 0x1b7   : > { %v691_v20 = vpop.f32.mrb[36].mxu0  ;;  %v2218_v10 = vmax.f32 %v2182_v23, 0.0  ;;  %v1610_v37 = vadd.f32 %v1574_v27, %v1531_v42  ;;  %v1687_v54 = vmul.f32 %v3609_v58, %v1646_v8  ;;  %v1799_v29 = vmul.f32 %v3619_v7, %v3741_v33  ;;  %v2063_v33 = vld [vmem:[#allocation2 + $0x56] sm:$0xff]  ;;  %v1229_v23 = vld [vmem:[#allocation2 + $0x40] sm:$0xff] }
 0x1b8   : > { %1191 = vst.msk [vmem:[#allocation2 + $0x80] sm:$0xff] %vm1174_vm2, %v1149_v55  ;;  %v863_v18 = vmin.f32 %v822_v4, 6.0  ;;  %v692_v22 = vadd.f32 %v3556_v43, %v691_v20  ;;  %v2879_v26 = vpop.f32.mrb[37].mxu0  ;;  %v1722_v48 = vadd.f32 %v1686_v3, %v1609_v25  ;;  %v1800_v5 = vmul.f32 %v3619_v7, %v3743_v62  ;;  %v1342_v42 = vld [vmem:[#allocation2 + $0x41] sm:$0xff]  ;;  %v1343_v20 = vld [vmem:[#allocation2 + $0x49] sm:$0xff] }
 0x1b9   : > { %v1723_v51 = vadd.f32 %v1687_v54, %v1610_v37  ;;  %v1878_v1 = vmul.f32 %v3633_v47, %v3798_v21  ;;  %v1879_v27 = vmul.f32 %v3633_v47, %v3800_v13  ;;  %v2217_v4 = vmax.f32 %v2181_v38, 0.0  ;;  %v2064_v26 = vld [vmem:[#allocation2 + $0x5e] sm:$0xff] }
 0x1ba   : > { %v1150_v61 = vmul.f32 %v3708_v60, %v863_v18  ;;  %v823_v2 = vmax.f32 %v692_v22, 0.0  ;;  %v1835_v8 = vadd.f32 %v1799_v29, %v1722_v48  ;;  %v3817_v62 = vmin.f32 %v2218_v10, 6.0  ;;  %v1230_v48 = vld [vmem:[#allocation2 + $0x48] sm:$0xff] }
 0x1bb   : > { %v696_v55 = vpop.f32.mrb[38].mxu0  ;;  %v1836_v25 = vadd.f32 %v1800_v5, %v1723_v51  ;;  %v1991_v3 = vmul.f32 %v3644_v63, %v1950_v49  ;;  %v1992_v22 = vmul.f32 %v3644_v63, %v1951_v46  ;;  %v2104_v38 = vmul.f32 %v3653_v12, %v2063_v33 }
 0x1bc   : > { %1192 = vst.msk [vmem:[#allocation2 + $0x88] sm:$0xff] %vm1174_vm2, %v1150_v61  ;;  %v864_v37 = vmin.f32 %v823_v2, 6.0  ;;  %v697_v60 = vadd.f32 %v3556_v43, %v696_v55  ;;  %v2882_v54 = vpop.f32.mrb[39].mxu0  ;;  %v1914_v18 = vadd.f32 %v1878_v1, %v1835_v8  ;;  %v1270_v10 = vmul.f32 %v3582_v15, %v1229_v23  ;;  %v1457_v55 = vld [vmem:[#allocation2 + $0x52] sm:$0xff] }
 0x1bd   : > { %v1915_v29 = vadd.f32 %v1879_v27, %v1836_v25  ;;  %v1383_v51 = vmul.f32 %v3577_v11, %v1342_v42  ;;  %v1384_v2 = vmul.f32 %v3577_v11, %v1343_v20  ;;  %v2105_v46 = vmul.f32 %v3653_v12, %v2064_v26 }
 0x1be   : > { %v1151_v49 = vmul.f32 %v3495_v24, %v864_v37  ;;  %v824_v5 = vmax.f32 %v697_v60, 0.0  ;;  %v2027_v61 = vadd.f32 %v1991_v3, %v1914_v18  ;;  %v1271_v8 = vmul.f32 %v3582_v15, %v1230_v48  ;;  %v1458_v3 = vld [vmem:[#allocation2 + $0x5a] sm:$0xff] }
 0x1bf   : > { %v701_v54 = vpop.f32.mrb[40].mxu0  ;;  %v2028_v1 = vadd.f32 %v1992_v22, %v1915_v29  ;;  %v1419_v27 = vadd.f32 %v1383_v51, %v1270_v10  ;;  %v3832_v25 = vmin.f32 %v2217_v4, 6.0  ;;  %v1237_v37 = vld [vmem:[#allocation2 + $0x80] sm:$0xff]  ;;  %v1496_v18 = vmul.f32 %v3593_v30, %v3774_v41 }
 0x1c0   : > { %1193 = vst.msk [vmem:[#allocation2 + $0x90] sm:$0xff] %vm1174_vm2, %v1151_v49  ;;  %v865_v33 = vmin.f32 %v824_v5, 6.0  ;;  %v702_v23 = vadd.f32 %v3556_v43, %v701_v54  ;;  %v2885_v42 = vpop.f32.mrb[41].mxu0  ;;  %v2140_v24 = vadd.f32 %v2104_v38, %v2027_v61  ;;  %v1420_v60 = vadd.f32 %v1384_v2, %v1271_v8  ;;  %v1647_v61 = vld [vmem:[#allocation2 + $0x53] sm:$0xff] }
 0x1c1   : > { %v2141_v20 = vadd.f32 %v2105_v46, %v2028_v1  ;;  %v1575_v22 = vmul.f32 %v3601_v50, %v1457_v55  ;;  %v1497_v49 = vmul.f32 %v3593_v30, %v3776_v17  ;;  %v1532_v5 = vadd.f32 %v1496_v18, %v1419_v27 }
 0x1c2   : > { %v1152_v26 = vmul.f32 %v3517_v31, %v865_v33  ;;  %v825_v48 = vmax.f32 %v702_v23, 0.0  ;;  %v2183_v10 = vadd.f32 %v3683_v9, %v2140_v24  ;;  %v1576_v41 = vmul.f32 %v3601_v50, %v1458_v3 }
 0x1c3   : > { %v706_v4 = vpop.f32.mrb[42].mxu0  ;;  %v1350_v51 = vld [vmem:[#allocation2 + $0x81] sm:$0xff]  ;;  %v2184_v38 = vadd.f32 %v3683_v9, %v2141_v20  ;;  %v1278_v1 = vmul.f32 %v3582_v15, %v1237_v37  ;;  %v1533_v42 = vadd.f32 %v1497_v49, %v1420_v60  ;;  %v1611_v17 = vadd.f32 %v1575_v22, %v1532_v5 }
 0x1c4   : > { %1194 = vst.msk [vmem:[#allocation2 + $0x98] sm:$0xff] %vm1174_vm2, %v1152_v26  ;;  %v866_v31 = vmin.f32 %v825_v48, 6.0  ;;  %v707_v2 = vadd.f32 %v3556_v43, %v706_v4  ;;  %v2888_v55 = vpop.f32.mrb[43].mxu0  ;;  %v1238_v54 = vld [vmem:[#allocation2 + $0x88] sm:$0xff]  ;;  %v1391_v46 = vmul.f32 %v3577_v11, %v1350_v51  ;;  %v2219_v33 = vmax.f32 %v2183_v10, 0.0  ;;  %v1648_v20 = vld [vmem:[#allocation2 + $0x5b] sm:$0xff] }
 0x1c5   : > { %v1463_v8 = vld [vmem:[#allocation2 + $0x82] sm:$0xff]  ;;  %v2220_v23 = vmax.f32 %v2184_v38, 0.0  ;;  %v1688_v18 = vmul.f32 %v3609_v58, %v1647_v61  ;;  %v1279_v48 = vmul.f32 %v3582_v15, %v1238_v54  ;;  %v1612_v10 = vadd.f32 %v1576_v41, %v1533_v42 }
 0x1c6   : > { %v1153_v27 = vmul.f32 %v3523_v32, %v866_v31  ;;  %v826_v24 = vmax.f32 %v707_v2, 0.0  ;;  %v1427_v3 = vadd.f32 %v1391_v46, %v1278_v1  ;;  %v1504_v37 = vmul.f32 %v3593_v30, %v1463_v8  ;;  %v1762_v54 = vld [vmem:[#allocation2 + $0x64] sm:$0xff] }
 0x1c7   : > { %v711_v26 = vpop.f32.mrb[44].mxu0  ;;  %v1351_v4 = vld [vmem:[#allocation2 + $0x89] sm:$0xff]  ;;  %v3853_v0 = vmin.f32 %v2220_v23, 6.0  ;;  %v3858_v49 = vmin.f32 %v2219_v33, 6.0  ;;  %v1689_v31 = vmul.f32 %v3609_v58, %v1648_v20  ;;  %v1724_v2 = vadd.f32 %v1688_v18, %v1611_v17 }
 0x1c8   : > { %v1464_v55 = vld [vmem:[#allocation2 + $0x8a] sm:$0xff]  ;;  %1195 = vst.msk [vmem:[#allocation2 + $0xa0] sm:$0xff] %vm1174_vm2, %v1153_v27  ;;  %v867_v60 = vmin.f32 %v826_v24, 6.0  ;;  %v712_v32 = vadd.f32 %v3556_v43, %v711_v26  ;;  %v2891_v22 = vpop.f32.mrb[45].mxu0  ;;  %v1392_v38 = vmul.f32 %v3577_v11, %v1351_v4  ;;  %v1540_v61 = vadd.f32 %v1504_v37, %v1427_v3 }
 0x1c9   : > { %v1239_v51 = vld [vmem:[#allocation2 + $0x90] sm:$0xff]  ;;  %v1505_v5 = vmul.f32 %v3593_v30, %v1464_v55  ;;  %v1725_v4 = vadd.f32 %v1689_v31, %v1612_v10  ;;  %v1801_v3 = vmul.f32 %v3619_v7, %v3798_v21  ;;  %v1802_v17 = vmul.f32 %v3619_v7, %v3800_v13 }
 0x1ca   : > { %v1154_v1 = vmul.f32 %v3537_v35, %v867_v60  ;;  %v827_v41 = vmax.f32 %v712_v32, 0.0  ;;  %v1428_v46 = vadd.f32 %v1392_v38, %v1279_v48  ;;  %v1280_v8 = vmul.f32 %v3582_v15, %v1239_v51  ;;  %v1763_v23 = vld [vmem:[#allocation2 + $0x6c] sm:$0xff] }
 0x1cb   : > { %v716_v42 = vpop.f32.mrb[0].mxu1  ;;  %v1465_v27 = vld [vmem:[#allocation2 + $0x92] sm:$0xff]  ;;  %v3874_v51 = vmul.f32 %v3633_v47, %v1762_v54  ;;  %v3879_v13 = vmul.f32 %v3633_v47, %v1763_v23  ;;  %v1952_v32 = vld [vmem:[#allocation2 + $0x65] sm:$0xff] }
 0x1cc   : > { %v1655_v24 = vld [vmem:[#allocation2 + $0x93] sm:$0xff]  ;;  %1196 = vst.msk [vmem:[#allocation2 + $0xa8] sm:$0xff] %vm1174_vm2, %v1154_v1  ;;  %v868_v35 = vmin.f32 %v827_v41, 6.0  ;;  %v717_v20 = vadd.f32 %v3556_v43, %v716_v42  ;;  %v2894_v18 = vpop.f32.mrb[1].mxu1  ;;  %v1583_v48 = vmul.f32 %v3601_v50, %v1465_v27  ;;  %v1541_v10 = vadd.f32 %v1505_v5, %v1428_v46 }
 0x1cd   : > { %v1768_v26 = vld [vmem:[#allocation2 + $0x94] sm:$0xff]  ;;  %v1696_v60 = vmul.f32 %v3609_v58, %v1655_v24  ;;  %v1506_v46 = vmul.f32 %v3593_v30, %v1465_v27  ;;  %v3885_v24 = vadd.f32 %v1801_v3, %v1724_v2 }
 0x1ce   : > { %v1240_v55 = vld [vmem:[#allocation2 + $0x98] sm:$0xff]  ;;  %v1809_v21 = vmul.f32 %v3619_v7, %v1768_v26  ;;  %v1155_v22 = vmul.f32 %v3539_v36, %v868_v35  ;;  %v828_v38 = vmax.f32 %v717_v20, 0.0  ;;  %v1619_v31 = vadd.f32 %v1583_v48, %v1540_v61 }
 0x1cf   : > { %v1352_v37 = vld [vmem:[#allocation2 + $0x91] sm:$0xff]  ;;  %v721_v41 = vpop.f32.mrb[2].mxu1  ;;  %v1466_v42 = vld [vmem:[#allocation2 + $0x9a] sm:$0xff]  ;;  %v1281_v5 = vmul.f32 %v3582_v15, %v1240_v55  ;;  %v3887_v26 = vadd.f32 %v1802_v17, %v1725_v4 }
 0x1d0   : > { %v1393_v1 = vmul.f32 %v3577_v11, %v1352_v37  ;;  %v1656_v18 = vld [vmem:[#allocation2 + $0x9b] sm:$0xff]  ;;  %1197 = vst.msk [vmem:[#allocation2 + $0xb0] sm:$0xff] %vm1174_vm2, %v1155_v22  ;;  %v869_v23 = vmin.f32 %v828_v38, 6.0  ;;  %v722_v36 = vadd.f32 %v3556_v43, %v721_v41  ;;  %v2897_v61 = vpop.f32.mrb[3].mxu1  ;;  %v1584_v35 = vmul.f32 %v3601_v50, %v1466_v42 }
 0x1d1   : > { %v1769_v54 = vld [vmem:[#allocation2 + $0x9c] sm:$0xff]  ;;  %v3893_v37 = vmul.f32 %v3644_v63, %v1952_v32  ;;  %v1697_v55 = vmul.f32 %v3609_v58, %v1656_v18  ;;  %v1732_v27 = vadd.f32 %v1696_v60, %v1619_v31  ;;  %v1507_v32 = vmul.f32 %v3593_v30, %v1466_v42 }
 0x1d2   : > { %v1353_v20 = vld [vmem:[#allocation2 + $0x99] sm:$0xff]  ;;  %v1810_v2 = vmul.f32 %v3619_v7, %v1769_v54  ;;  %v1156_v3 = vmul.f32 %v3545_v39, %v869_v23  ;;  %v829_v17 = vmax.f32 %v722_v36, 0.0  ;;  %v1620_v22 = vadd.f32 %v1584_v35, %v1541_v10 }
 0x1d3   : > { %v1241_v48 = vld [vmem:[#allocation2 + $0xa0] sm:$0xff]  ;;  %v1394_v4 = vmul.f32 %v3577_v11, %v1353_v20  ;;  %v1429_v38 = vadd.f32 %v1393_v1, %v1280_v8  ;;  %v726_v41 = vpop.f32.mrb[4].mxu1  ;;  %v1845_v33 = vadd.f32 %v1809_v21, %v1732_v27  ;;  %v1242_v1 = vld [vmem:[#allocation2 + $0xa8] sm:$0xff] }
 0x1d4   : > { %v1770_v61 = vld [vmem:[#allocation2 + $0xa4] sm:$0xff]  ;;  %v3901_v18 = vmul.f32 %v3582_v15, %v1241_v48  ;;  %1198 = vst.msk [vmem:[#allocation2 + $0xb8] sm:$0xff] %vm1174_vm2, %v1156_v3  ;;  %v870_v60 = vmin.f32 %v829_v17, 6.0  ;;  %v727_v11 = vadd.f32 %v3556_v43, %v726_v41  ;;  %v2900_v39 = vpop.f32.mrb[5].mxu1  ;;  %v1733_v31 = vadd.f32 %v1697_v55, %v1620_v22 }
 0x1d5   : > { %v1960_v29 = vld [vmem:[#allocation2 + $0xa5] sm:$0xff]  ;;  %v1430_v19 = vadd.f32 %v1394_v4, %v1281_v5  ;;  %v1888_v8 = vmul.f32 %v3633_v47, %v1770_v61  ;;  %v1542_v42 = vadd.f32 %v1506_v46, %v1429_v38 }
 0x1d6   : > { %v2073_v52 = vld [vmem:[#allocation2 + $0xa6] sm:$0xff]  ;;  %v2001_v54 = vmul.f32 %v3644_v63, %v1960_v29  ;;  %v1157_v23 = vmul.f32 %v3547_v40, %v870_v60  ;;  %v830_v36 = vmax.f32 %v727_v11, 0.0  ;;  %v1846_v35 = vadd.f32 %v1810_v2, %v1733_v31 }
 0x1d7   : > { %v3906_v10 = vld [vmem:[#allocation2 + $0xa2] sm:$0xff]  ;;  %v2114_v30 = vmul.f32 %v3653_v12, %v2073_v52  ;;  %v1543_v5 = vadd.f32 %v1507_v32, %v1430_v19  ;;  %v1924_v20 = vadd.f32 %v1888_v8, %v1845_v33  ;;  %v731_v43 = vpop.f32.mrb[6].mxu1  ;;  %v1771_v48 = vld [vmem:[#allocation2 + $0xac] sm:$0xff]  ;;  %v1811_v29 = vmul.f32 %v3619_v7, %v1770_v61  ;;  %v3922_v19 = vld [vmem:[%s4578_s3] ss:$0 sm:$0xff] }
 0x1d8   : > { %v1657_v21 = vld [vmem:[#allocation2 + $0xa3] sm:$0xff]  ;;  %v1961_v55 = vld [vmem:[#allocation2 + $0xad] sm:$0xff]  ;;  %v1585_v4 = vmul.f32 %v3601_v50, %v3906_v10  ;;  %v3916_v52 = vmul.f32 %v3582_v15, %v1242_v1  ;;  %1199 = vst.msk [vmem:[#allocation2 + $0xc0] sm:$0xff] %vm1174_vm2, %v1157_v23  ;;  %v871_v40 = vmin.f32 %v830_v36, 6.0  ;;  %v732_v33 = vadd.f32 %v3922_v19, %v731_v43  ;;  %v2903_v46 = vpop.f32.mrb[7].mxu1 }
 0x1d9   : > { %v2074_v27 = vld [vmem:[#allocation2 + $0xae] sm:$0xff]  ;;  %v1698_v3 = vmul.f32 %v3609_v58, %v1657_v21  ;;  %v1889_v2 = vmul.f32 %v3633_v47, %v1771_v48  ;;  %v2002_v17 = vmul.f32 %v3644_v63, %v1961_v55  ;;  %v2037_v15 = vadd.f32 %v2001_v54, %v1924_v20 }
 0x1da   : > { %v3927_v22 = vld [vmem:[#allocation2 + $0xaa] sm:$0xff]  ;;  %v2115_v41 = vmul.f32 %v3653_v12, %v2074_v27  ;;  %v1621_v32 = vadd.f32 %v1585_v4, %v1542_v42  ;;  %v1158_v60 = vmul.f32 %v3558_v44, %v871_v40  ;;  %v831_v11 = vmax.f32 %v732_v33, 0.0 }
 0x1db   : > { %v1658_v38 = vld [vmem:[#allocation2 + $0xab] sm:$0xff]  ;;  %v1586_v61 = vmul.f32 %v3601_v50, %v3927_v22  ;;  %v1925_v39 = vadd.f32 %v1889_v2, %v1846_v35  ;;  %v736_v8 = vpop.f32.mrb[8].mxu1  ;;  %v2150_v21 = vadd.f32 %v2114_v30, %v2037_v15  ;;  %v3934_v36 = vld [vmem:[#allocation2 + $0xb4] sm:$0xff]  ;;  %v1812_v54 = vmul.f32 %v3619_v7, %v1771_v48  ;;  %v1354_v35 = vld [vmem:[#allocation2 + $0xa1] sm:$0xff] }
 0x1dc   : > { %v1699_v31 = vmul.f32 %v3609_v58, %v1658_v38  ;;  %v1734_v23 = vadd.f32 %v1698_v3, %v1621_v32  ;;  %v1962_v20 = vld [vmem:[#allocation2 + $0xb5] sm:$0xff]  ;;  %1200 = vst.msk [vmem:[#allocation2 + $0xc8] sm:$0xff] %vm1174_vm2, %v1158_v60  ;;  %v872_v50 = vmin.f32 %v831_v11, 6.0  ;;  %v737_v42 = vadd.f32 %v3922_v19, %v736_v8  ;;  %v2906_v44 = vpop.f32.mrb[9].mxu1 }
 0x1dd   : > { %v1622_v1 = vadd.f32 %v1586_v61, %v1543_v5  ;;  %v2075_v43 = vld [vmem:[#allocation2 + $0xb6] sm:$0xff]  ;;  %v2038_v55 = vadd.f32 %v2002_v17, %v1925_v39  ;;  %v1890_v58 = vmul.f32 %v3633_v47, %v3934_v36  ;;  %v2193_v30 = vadd.f32 %v3683_v9, %v2150_v21 }
 0x1de   : > { %v1847_v27 = vadd.f32 %v1811_v29, %v1734_v23  ;;  %v2003_v4 = vmul.f32 %v3644_v63, %v1962_v20  ;;  %v1159_v7 = vmul.f32 %v3562_v53, %v872_v50  ;;  %v832_v48 = vmax.f32 %v737_v42, 0.0  ;;  %v3950_v29 = vld [vmem:[%s4579_s4 + $0x1] ss:$0 sm:$0xff] }
 0x1df   : > { %v1735_v5 = vadd.f32 %v1699_v31, %v1622_v1  ;;  %v2151_v3 = vadd.f32 %v2115_v41, %v2038_v55  ;;  %v2116_v40 = vmul.f32 %v3653_v12, %v2075_v43  ;;  %v741_v33 = vpop.f32.mrb[10].mxu1  ;;  %v2229_v46 = vmax.f32 %v2193_v30, 0.0  ;;  %v3945_v2 = vld [vmem:[#allocation2 + $0xbc] sm:$0xff]  ;;  %v1355_v31 = vld [vmem:[#allocation2 + $0xa9] sm:$0xff] }
 0x1e0   : > { %v1926_v38 = vadd.f32 %v1890_v58, %v1847_v27  ;;  %v1963_v15 = vld [vmem:[#allocation2 + $0xbd] sm:$0xff]  ;;  %v1395_v32 = vmul.f32 %v3950_v29, %v1354_v35  ;;  %1201 = vst.msk [vmem:[#allocation2 + $0xd0] sm:$0xff] %vm1174_vm2, %v1159_v7  ;;  %v873_v53 = vmin.f32 %v832_v48, 6.0  ;;  %v742_v41 = vadd.f32 %v3922_v19, %v741_v33  ;;  %v2909_v60 = vpop.f32.mrb[11].mxu1  ;;  %v3972_v27 = vld [vmem:[#allocation2 + $0xb2] sm:$0xff] }
 0x1e1   : > { %v1848_v17 = vadd.f32 %v1812_v54, %v1735_v5  ;;  %v2076_v61 = vld [vmem:[#allocation2 + $0xbe] sm:$0xff]  ;;  %v2194_v11 = vadd.f32 %v3683_v9, %v2151_v3  ;;  %v1891_v39 = vmul.f32 %v3633_v47, %v3945_v2  ;;  %v2265_v8 = vmin.f32 %v2229_v46, 6.0 }
 0x1e2   : > { %v2004_v21 = vmul.f32 %v3644_v63, %v1963_v15  ;;  %v2039_v1 = vadd.f32 %v2003_v4, %v1926_v38  ;;  %v2117_v23 = vmul.f32 %v3653_v12, %v2076_v61  ;;  %v1160_v54 = vmul.f32 %v3588_v28, %v873_v53  ;;  %v3966_v47 = vld [vmem:[%s4579_s4 + $0x2] ss:$0 sm:$0xff]  ;;  %v3974_v4 = vld [vmem:[#allocation2 + $0xba] sm:$0xff] }
 0x1e3   : > { %v833_v20 = vmax.f32 %v742_v41, 0.0  ;;  %v2230_v43 = vmax.f32 %v2194_v11, 0.0  ;;  %v1927_v50 = vadd.f32 %v1891_v39, %v1848_v17  ;;  %v746_v42 = vpop.f32.mrb[12].mxu1  ;;  %v1396_v55 = vmul.f32 %v3950_v29, %v1355_v31  ;;  %v1660_v15 = vld [vmem:[#allocation2 + $0xbb] sm:$0xff] }
 0x1e4   : > { %v2152_v44 = vadd.f32 %v2116_v40, %v2039_v1  ;;  %v1431_v58 = vadd.f32 %v1395_v32, %v3901_v18  ;;  %v1508_v63 = vmul.f32 %v3966_v47, %v3906_v10  ;;  %1202 = vst.msk [vmem:[#allocation2 + $0xd8] sm:$0xff] %vm1174_vm2, %v1160_v54  ;;  %v747_v12 = vadd.f32 %v3922_v19, %v746_v42  ;;  %v2912_v35 = vpop.f32.mrb[13].mxu1  ;;  %v1659_v40 = vld [vmem:[#allocation2 + $0xb3] sm:$0xff]  ;;  %v2285_v61 = vld [vmem:[%s4581_s6] sm:$0xff] }
 0x1e5   : > { %v874_v28 = vmin.f32 %v833_v20, 6.0  ;;  %v2266_v30 = vmin.f32 %v2230_v43, 6.0  ;;  %v2040_v5 = vadd.f32 %v2004_v21, %v1927_v50  ;;  %v1432_v7 = vadd.f32 %v1396_v55, %v3916_v52  ;;  %v3993_v52 = vld [vmem:[%s4579_s4 + $0x3] ss:$0 sm:$0xff]  ;;  %2814 = vmatprep.mubr.msk.f32.mxu1 %vm1174_vm2, %v2285_v61  ;;  %v4011_v1 = vld [vmem:[#allocation2 + $0xc4] sm:$0xff] }
 0x1e6   : > { %v2195_v10 = vadd.f32 %v3683_v9, %v2152_v44  ;;  %v1509_v48 = vmul.f32 %v3966_v47, %v3927_v22  ;;  %v1544_v3 = vadd.f32 %v1508_v63, %v1431_v58  ;;  %v834_v46 = vmax.f32 %v747_v12, 0.0  ;;  %v4025_v58 = vld [vmem:[%s4579_s4 + $0x5] ss:$0 sm:$0xff] }
 0x1e7   : > { %v1161_v33 = vmul.f32 %v3614_v6, %v874_v28  ;;  %v2957_v17 = vpack.c.bf16 %v2266_v30, %v2265_v8  ;;  %v2153_v38 = vadd.f32 %v2117_v23, %v2040_v5  ;;  %v751_v32 = vpop.f32.mrb[14].mxu1  ;;  %v1587_v22 = vmul.f32 %v3993_v52, %v3972_v27  ;;  %v4008_v8 = vld [vmem:[%s4579_s4 + $0x4] ss:$0 sm:$0xff]  ;;  %v4019_v50 = vld [vmem:[#allocation2 + $0xcc] sm:$0xff] }
 0x1e8   : > { %v2231_v53 = vmax.f32 %v2195_v10, 0.0  ;;  %v1545_v41 = vadd.f32 %v1509_v48, %v1432_v7  ;;  %v1588_v6 = vmul.f32 %v3993_v52, %v3974_v4  ;;  %v875_v60 = vmin.f32 %v834_v46, 6.0  ;;  %v2915_v39 = vpop.f32.mrb[15].mxu1  ;;  %v1965_v63 = vld [vmem:[#allocation2 + $0xcd] sm:$0xff] }
 0x1e9   : > { %1203 = vst.msk [vmem:[#allocation2 + $0xe0] sm:$0xff] %vm1174_vm2, %v1161_v33  ;;  %v752_v11 = vadd.f32 %v3922_v19, %v751_v32  ;;  %2959 = vmatprep.subr.msk.bf16.mxu1 %vm3978_vm3, %v2957_v17  ;;  %v2196_v31 = vadd.f32 %v3683_v9, %v2153_v38  ;;  %v1700_v21 = vmul.f32 %v4008_v8, %v1659_v40  ;;  %v2077_v10 = vld [vmem:[#allocation2 + $0xc6] sm:$0xff]  ;;  %v1243_v33 = vld [vmem:[#allocation2 + $0xb0] sm:$0xff]  ;;  %v1244_v32 = vld [vmem:[#allocation2 + $0xb8] sm:$0xff] }
 0x1ea   : > { %v4589_v23 = vpack.c.bf16 %v3745_v45, %v3731_v16  ;;  %v2267_v54 = vmin.f32 %v2231_v53, 6.0  ;;  %v1623_v20 = vadd.f32 %v1587_v22, %v1544_v3  ;;  %v1624_v43 = vadd.f32 %v1588_v6, %v1545_v41  ;;  %v1964_v45 = vld [vmem:[#allocation2 + $0xc5] sm:$0xff]  ;;  %v1356_v53 = vld [vmem:[#allocation2 + $0xb1] sm:$0xff]  ;;  %v1357_v39 = vld [vmem:[#allocation2 + $0xb9] sm:$0xff] }
 0x1eb   : > { %v1701_v9 = vmul.f32 %v4008_v8, %v1660_v15  ;;  %v1162_v42 = vmul.f32 %v3697_v57, %v875_v60  ;;  %v835_v44 = vmax.f32 %v752_v11, 0.0  ;;  %v2232_v55 = vmax.f32 %v2196_v31, 0.0  ;;  %v756_v28 = vpop.f32.mrb[16].mxu1  ;;  %v4034_v57 = vld [vmem:[%s4579_s4 + $0x6] ss:$0 sm:$0xff] }
 0x1ec   : > { %2962 = vmatpush3.bf16.xpose.msk.msra.mxu1 %vm3978_vm3, %v4589_v23  ;;  %v1813_v16 = vmul.f32 %v4025_v58, %v3934_v36  ;;  %v1736_v12 = vadd.f32 %v1700_v21, %v1623_v20  ;;  %v1814_v30 = vmul.f32 %v4025_v58, %v3945_v2  ;;  %v1892_v5 = vmul.f32 %v4034_v57, %v4011_v1  ;;  %v2918_v48 = vpop.f32.mrb[17].mxu1  ;;  %v2078_v2 = vld [vmem:[#allocation2 + $0xce] sm:$0xff]  ;;  %v4045_v38 = vld [vmem:[%s4579_s4 + $0x7] ss:$0 sm:$0xff]  ;;  %v4053_v60 = vld [vmem:[%s4579_s4 + $0x8] ss:$0 sm:$0xff] }
 0x1ed   : > { %v1737_v35 = vadd.f32 %v1701_v9, %v1624_v43  ;;  %1204 = vst.msk [vmem:[#allocation2 + $0xe8] sm:$0xff] %vm1174_vm2, %v1162_v42  ;;  %v876_v36 = vmin.f32 %v835_v44, 6.0  ;;  %v757_v7 = vadd.f32 %v3922_v19, %v756_v28  ;;  %v2268_v3 = vmin.f32 %v2232_v55, 6.0  ;;  %v4060_v43 = vld [vmem:[%s4579_s4] ss:$0 sm:$0xff] }
 0x1ee   : > { %v1893_v40 = vmul.f32 %v4034_v57, %v4019_v50  ;;  %v1849_v46 = vadd.f32 %v1813_v16, %v1736_v12  ;;  %v2005_v15 = vmul.f32 %v4045_v38, %v1964_v45  ;;  %v2006_v61 = vmul.f32 %v4045_v38, %v1965_v63  ;;  %v4069_v16 = vld [vmem:[#allocation2 + $0xc2] sm:$0xff] }
 0x1ef   : > { %v1850_v17 = vadd.f32 %v1814_v30, %v1737_v35  ;;  %v1163_v41 = vmul.f32 %v3729_v14, %v876_v36  ;;  %v836_v22 = vmax.f32 %v757_v7, 0.0  ;;  %v2963_v6 = vpack.c.bf16 %v2268_v3, %v2267_v54  ;;  %v761_v31 = vpop.f32.mrb[18].mxu1  ;;  %v4077_v35 = vld [vmem:[#allocation2 + $0xca] sm:$0xff] }
 0x1f0   : > { %v2118_v11 = vmul.f32 %v4053_v60, %v2077_v10  ;;  %v1928_v21 = vadd.f32 %v1892_v5, %v1849_v46  ;;  %v2119_v20 = vmul.f32 %v4053_v60, %v2078_v2  ;;  %v1284_v14 = vmul.f32 %v4060_v43, %v1243_v33  ;;  %v2921_v42 = vpop.f32.mrb[19].mxu1  ;;  %v1662_v46 = vld [vmem:[#allocation2 + $0xcb] sm:$0xff] }
 0x1f1   : > { %v1929_v23 = vadd.f32 %v1893_v40, %v1850_v17  ;;  %1205 = vst.msk [vmem:[#allocation2 + $0xf0] sm:$0xff] %vm1174_vm2, %v1163_v41  ;;  %v877_v54 = vmin.f32 %v836_v22, 6.0  ;;  %v762_v9 = vadd.f32 %v3922_v19, %v761_v31  ;;  %2965 = vmatprep.subr.msk.bf16.mxu1 %vm3978_vm3, %v2963_v6  ;;  %v1285_v44 = vmul.f32 %v4060_v43, %v1244_v32 }
 0x1f2   : > { %v1397_v55 = vmul.f32 %v3950_v29, %v1356_v53  ;;  %v4590_v45 = vpack.c.bf16 %v3793_v34, %v3791_v59  ;;  %v2041_v63 = vadd.f32 %v2005_v15, %v1928_v21  ;;  %v1398_v12 = vmul.f32 %v3950_v29, %v1357_v39  ;;  %v1661_v59 = vld [vmem:[#allocation2 + $0xc3] sm:$0xff]  ;;  %v1091_v34 = vpop.permute.xlu0 %1090  ;;  %v4099_v21 = vld [vmem:[#allocation2 + $0xd4] sm:$0xff] }
 0x1f3   : > { %v2042_v28 = vadd.f32 %v2006_v61, %v1929_v23  ;;  %v1510_v30 = vmul.f32 %v3966_v47, %v3972_v27  ;;  %v1164_v5 = vmul.f32 %v3753_v56, %v877_v54  ;;  %v837_v10 = vmax.f32 %v762_v9, 0.0  ;;  %v766_v48 = vpop.f32.mrb[20].mxu1  ;;  %v4093_v61 = vld [vmem:[%s4580_s5] ss:$0 sm:$0xff] }
 0x1f4   : > { %2968 = vmatpush3.bf16.xpose.msk.msra.mxu1 %vm3978_vm3, %v4590_v45  ;;  %v1433_v36 = vadd.f32 %v1397_v55, %v1284_v14  ;;  %v1511_v7 = vmul.f32 %v3966_v47, %v3974_v4  ;;  %v2154_v3 = vadd.f32 %v2118_v11, %v2041_v63  ;;  %v1434_v2 = vadd.f32 %v1398_v12, %v1285_v44  ;;  %v2924_v17 = vpop.f32.mrb[21].mxu1  ;;  %v4101_v9 = vld [vmem:[#allocation2 + $0xdc] sm:$0xff] }
 0x1f5   : > { %v2155_v40 = vadd.f32 %v2119_v20, %v2042_v28  ;;  %v1589_v33 = vmul.f32 %v3993_v52, %v4069_v16  ;;  %1206 = vst.msk [vmem:[#allocation2 + $0xf8] sm:$0xff] %vm1174_vm2, %v1164_v5  ;;  %v878_v27 = vmin.f32 %v837_v10, 6.0  ;;  %v767_v56 = vadd.f32 %v3922_v19, %v766_v48  ;;  %v1966_v12 = vld [vmem:[#allocation2 + $0xd5] sm:$0xff] }
 0x1f6   : > { %v1546_v15 = vadd.f32 %v1510_v30, %v1433_v36  ;;  %v1590_v4 = vmul.f32 %v3993_v52, %v4077_v35  ;;  %v2197_v32 = vadd.f32 %v4093_v61, %v2154_v3  ;;  %v1547_v41 = vadd.f32 %v1511_v7, %v1434_v2  ;;  %v1967_v30 = vld [vmem:[#allocation2 + $0xdd] sm:$0xff]  ;;  %v1096_v5 = vpop.permute.xlu0 %1095 }
 0x1f7   : > { %v2198_v53 = vadd.f32 %v4093_v61, %v2155_v40  ;;  %v1702_v22 = vmul.f32 %v4008_v8, %v1661_v59  ;;  %v1165_v6 = vmul.f32 %v1091_v34, %v878_v27  ;;  %v838_v11 = vmax.f32 %v767_v56, 0.0  ;;  %v771_v23 = vpop.f32.mrb[22].mxu1  ;;  %v2080_v2 = vld [vmem:[#allocation2 + $0xde] sm:$0xff] }
 0x1f8   : > { %v1625_v39 = vadd.f32 %v1589_v33, %v1546_v15  ;;  %v1703_v31 = vmul.f32 %v4008_v8, %v1662_v46  ;;  %v2233_v20 = vmax.f32 %v2197_v32, 0.0  ;;  %v1626_v54 = vadd.f32 %v1590_v4, %v1547_v41  ;;  %v2927_v45 = vpop.f32.mrb[23].mxu1  ;;  %v1245_v33 = vld [vmem:[#allocation2 + $0xc0] sm:$0xff]  ;;  %v1246_v46 = vld [vmem:[#allocation2 + $0xc8] sm:$0xff] }
 0x1f9   : > { %v2234_v14 = vmax.f32 %v2198_v53, 0.0  ;;  %v1815_v42 = vmul.f32 %v4025_v58, %v4011_v1  ;;  %1207 = vst.msk [vmem:[#allocation2 + $0x100] sm:$0xff] %vm1174_vm2, %v1165_v6  ;;  %v879_v44 = vmin.f32 %v838_v11, 6.0  ;;  %v772_v55 = vadd.f32 %v3922_v19, %v771_v23  ;;  %v2079_v1 = vld [vmem:[#allocation2 + $0xd6] sm:$0xff]  ;;  %v1358_v4 = vld [vmem:[#allocation2 + $0xc1] sm:$0xff]  ;;  %v1359_v11 = vld [vmem:[#allocation2 + $0xc9] sm:$0xff] }
 0x1fa   : > { %v1738_v63 = vadd.f32 %v1702_v22, %v1625_v39  ;;  %v1816_v28 = vmul.f32 %v4025_v58, %v4019_v50  ;;  %v2269_v10 = vmin.f32 %v2233_v20, 6.0  ;;  %v1739_v7 = vadd.f32 %v1703_v31, %v1626_v54  ;;  %v1101_v39 = vpop.permute.xlu1 %1100  ;;  %v2544_v54 = vld [vmem:[%s3271_s23] sm:$0xff] }
 0x1fb   : > { %v2270_v36 = vmin.f32 %v2234_v14, 6.0  ;;  %v1894_v59 = vmul.f32 %v4034_v57, %v4099_v21  ;;  %v1166_v34 = vmul.f32 %v1096_v5, %v879_v44  ;;  %v839_v48 = vmax.f32 %v772_v55, 0.0  ;;  %v776_v27 = vpop.f32.mrb[24].mxu1  ;;  %2550 = vrot.lane.b32.xlu1 %v2544_v54, %s3161_s21 }
 0x1fc   : > { %v1851_v3 = vadd.f32 %v1815_v42, %v1738_v63  ;;  %v1895_v40 = vmul.f32 %v4034_v57, %v4101_v9  ;;  %v1852_v56 = vadd.f32 %v1816_v28, %v1739_v7  ;;  %v2007_v17 = vmul.f32 %v4045_v38, %v1966_v12  ;;  %v2930_v41 = vpop.f32.mrb[25].mxu1  ;;  %v2545_v42 = vld [vmem:[%s3271_s23 + $0x8] sm:$0xff]  ;;  %v4131_v12 = vld [vmem:[#allocation2 + $0xd2] sm:$0xff] }
 0x1fd   : > { %v2969_v50 = vpack.c.bf16 %v2270_v36, %v2269_v10  ;;  %v2008_v15 = vmul.f32 %v4045_v38, %v1967_v30  ;;  %1208 = vst.msk [vmem:[#allocation2 + $0x108] sm:$0xff] %vm1174_vm2, %v1166_v34  ;;  %v880_v32 = vmin.f32 %v839_v48, 6.0  ;;  %v777_v53 = vadd.f32 %v3922_v19, %v776_v27  ;;  %v4133_v30 = vld [vmem:[#allocation2 + $0xda] sm:$0xff]  ;;  %2552 = vrot.lane.b32.xlu0 %v2545_v42, %s3161_s21  ;;  %v2546_v7 = vld [vmem:[%s3271_s23 + $0x10] sm:$0xff]  ;;  %s2583_s23 = sshll.u32 %s298_s20, 4  ;;  %s4534_s23 = int_to_ptr.vmem [resolvable:$true] %s2583_s23 }
 0x1fe   : > { %v1930_v22 = vadd.f32 %v1894_v59, %v1851_v3  ;;  %v2120_v6 = vmul.f32 %v4053_v60, %v2079_v1  ;;  %v1931_v31 = vadd.f32 %v1895_v40, %v1852_v56  ;;  %v2121_v23 = vmul.f32 %v4053_v60, %v2080_v2  ;;  %v1663_v40 = vld [vmem:[#allocation2 + $0xd3] sm:$0xff]  ;;  %v1664_v2 = vld [vmem:[#allocation2 + $0xdb] sm:$0xff]  ;;  %v1111_v54 = vpop.permute.xlu1 %1110  ;;  %s3094_s10 = scalar_lea.vmem %s4534_s23, 384 }
 0x1ff   : > { %2971 = vmatprep.subr.msk.bf16.mxu1 %vm3978_vm3, %v2969_v50  ;;  %v1286_v20 = vmul.f32 %v4060_v43, %v1245_v33  ;;  %v1287_v14 = vmul.f32 %v4060_v43, %v1246_v46  ;;  %v1167_v44 = vmul.f32 %v1101_v39, %v880_v32  ;;  %v4591_v55 = vpack.c.bf16 %v3817_v62, %v3832_v25  ;;  %v781_v5 = vpop.f32.mrb[26].mxu1  ;;  %v1106_v33 = vpop.permute.xlu0 %1105  ;;  %p3095_p11 = scmp.ne.s32.totalorder %s4534_s23, %s3094_s10 }
 0x200   : > { %v840_v45 = vmax.f32 %v777_v53, 0.0  ;;  %v2043_v63 = vadd.f32 %v2007_v17, %v1930_v22  ;;  %v1399_v28 = vmul.f32 %v3950_v29, %v1358_v4  ;;  %v2044_v10 = vadd.f32 %v2008_v15, %v1931_v31  ;;  %v2933_v48 = vpop.f32.mrb[27].mxu1  ;;  %2554 = vrot.lane.b32.xlu1 %v2546_v7, %s3161_s21  ;;  %s3017_s21 = smul.u32 384, %s3230_s9  ;;  %s3163_s9 = smov [#allocation3]  }
 0x201   : > { %2974 = vmatpush3.bf16.xpose.msk.msra.mxu1 %vm3978_vm3, %v4591_v55  ;;  %v1400_v36 = vmul.f32 %v3950_v29, %v1359_v11  ;;  %v1512_v62 = vmul.f32 %v3966_v47, %v4069_v16  ;;  %v1513_v25 = vmul.f32 %v3966_v47, %v4077_v35  ;;  %1209 = vst.msk [vmem:[#allocation2 + $0x110] sm:$0xff] %vm1174_vm2, %v1167_v44  ;;  %p3096_p12 = pnand %p3095_p11, %p3247_p5  ;;  %s3098_s12 = sshll.u32 %s3163_s9, 4  ;;  %s3099_s12 = int_to_ptr.vmem [resolvable:$false] %s3098_s12 }
 0x202   : > { %v881_v59 = vmin.f32 %v840_v45, 6.0  ;;  %v782_v1 = vadd.f32 %v3922_v19, %v781_v5  ;;  %v2156_v34 = vadd.f32 %v2120_v6, %v2043_v63  ;;  %v1435_v3 = vadd.f32 %v1399_v28, %v1286_v20  ;;  %v4153_v20 = vld [vmem:[#allocation2 + $0xe4] sm:$0xff]  ;;  %s4532_s25 = scalar_lea.hbm %s4583_s8, %s3017_s21  ;;  %s3100_s13 = scalar_lea.vmem %s3099_s12, 768 }
 0x203   : > { %v2157_v46 = vadd.f32 %v2121_v23, %v2044_v10  ;;  %v1436_v50 = vadd.f32 %v1400_v36, %v1287_v14  ;;  %v1591_v16 = vmul.f32 %v3993_v52, %v4131_v12  ;;  %v1592_v35 = vmul.f32 %v3993_v52, %v4133_v30  ;;  %v786_v32 = vpop.f32.mrb[28].mxu1  ;;  %v4155_v14 = vld [vmem:[#allocation2 + $0xec] sm:$0xff]  ;;  %p3097_p13 = pneg %p3096_p12  ;;  %p3101_p0 = scmp.lt.s32.totalorder %s4534_s23, %s3099_s12 }
 0x204   : > { %v1168_v27 = vmul.f32 %v1106_v33, %v881_v59  ;;  %v841_v56 = vmax.f32 %v782_v1, 0.0  ;;  %v2199_v17 = vadd.f32 %v4093_v61, %v2156_v34  ;;  %v1548_v15 = vadd.f32 %v1512_v62, %v1435_v3  ;;  %v2936_v31 = vpop.f32.mrb[29].mxu1  ;;  %v1968_v63 = vld [vmem:[#allocation2 + $0xe5] sm:$0xff]  ;;  %v1969_v62 = vld [vmem:[#allocation2 + $0xed] sm:$0xff]  ;;  %p3102_p1 = scmp.lt.s32.totalorder %s3100_s13, %s3094_s10 }
 0x205   : > { %v2200_v4 = vadd.f32 %v4093_v61, %v2157_v46  ;;  %v1549_v53 = vadd.f32 %v1513_v25, %v1436_v50  ;;  %v1704_v41 = vmul.f32 %v4008_v8, %v1663_v40  ;;  %v1705_v22 = vmul.f32 %v4008_v8, %v1664_v2  ;;  %v2081_v25 = vld [vmem:[#allocation2 + $0xe6] sm:$0xff]  ;;  %v1116_v50 = vpop.permute.xlu0 %1115 }
 0x206   : > { %1210 = vst.msk [vmem:[#allocation2 + $0x118] sm:$0xff] %vm1174_vm2, %v1168_v27  ;;  %v882_v6 = vmin.f32 %v841_v56, 6.0  ;;  %v2235_v11 = vmax.f32 %v2199_v17, 0.0  ;;  %v787_v39 = vadd.f32 %v3922_v19, %v786_v32  ;;  %v1627_v23 = vadd.f32 %v1591_v16, %v1548_v15  ;;  %v1953_v33 = vld [vmem:[#allocation2 + $0x6d] sm:$0xff]  ;;  %p3103_p2 = por %p3102_p1, %p3101_p0 }
 0x207   : > { %v2236_v42 = vmax.f32 %v2200_v4, 0.0  ;;  %v1628_v44 = vadd.f32 %v1592_v35, %v1549_v53  ;;  %v1817_v55 = vmul.f32 %v4025_v58, %v4099_v21  ;;  %v1818_v45 = vmul.f32 %v4025_v58, %v4101_v9  ;;  %v791_v59 = vpop.f32.mrb[30].mxu1  ;;  %v2082_v21 = vld [vmem:[#allocation2 + $0xee] sm:$0xff]  ;;  %v2065_v17 = vld [vmem:[#allocation2 + $0x66] sm:$0xff] }
 0x208   : > { %v1169_v28 = vmul.f32 %v1111_v54, %v882_v6  ;;  %v2271_v5 = vmin.f32 %v2235_v11, 6.0  ;;  %v842_v10 = vmax.f32 %v787_v39, 0.0  ;;  %v1740_v36 = vadd.f32 %v1704_v41, %v1627_v23  ;;  %v2939_v46 = vpop.f32.mrb[31].mxu1  ;;  %v2066_v15 = vld [vmem:[#allocation2 + $0x6e] sm:$0xff]  ;;  %p3104_p3 = pnand %p3103_p2, %p3097_p13 }
 0x209   : > { %v2272_v7 = vmin.f32 %v2236_v42, 6.0  ;;  %v1741_v1 = vadd.f32 %v1705_v22, %v1628_v44  ;;  %v1896_v34 = vmul.f32 %v4034_v57, %v4153_v20  ;;  %v1897_v48 = vmul.f32 %v4034_v57, %v4155_v14  ;;  %v1247_v23 = vld [vmem:[#allocation2 + $0xd0] sm:$0xff] }
 0x20a   : > { %1211 = vst.msk [vmem:[#allocation2 + $0x120] sm:$0xff] %vm1174_vm2, %v1169_v28  ;;  %v883_v9 = vmin.f32 %v842_v10, 6.0  ;;  %v792_v3 = vadd.f32 %v3922_v19, %v791_v59  ;;  %v1853_v40 = vadd.f32 %v1817_v55, %v1740_v36  ;;  %v2009_v2 = vmul.f32 %v4045_v38, %v1968_v63 }
 0x20b   : > { %v2975_v16 = vpack.c.bf16 %v2272_v7, %v2271_v5  ;;  %v1854_v35 = vadd.f32 %v1818_v45, %v1741_v1  ;;  %v2010_v27 = vmul.f32 %v4045_v38, %v1969_v62  ;;  %v2122_v56 = vmul.f32 %v4053_v60, %v2081_v25  ;;  %v796_v31 = vpop.f32.mrb[32].mxu1 }
 0x20c   : > { %v1170_v4 = vmul.f32 %v1116_v50, %v883_v9  ;;  %v843_v32 = vmax.f32 %v792_v3, 0.0  ;;  %v1932_v53 = vadd.f32 %v1896_v34, %v1853_v40  ;;  %v2123_v41 = vmul.f32 %v4053_v60, %v2082_v21  ;;  %v1361_v34 = vld [vmem:[#allocation2 + $0xd9] sm:$0xff]  ;;  %v1126_v50 = vpop.permute.xlu0 %1125 }
 0x20d   : > { %2977 = vmatprep.subr.msk.bf16.mxu1 %vm3978_vm3, %v2975_v16  ;;  %v1933_v22 = vadd.f32 %v1897_v48, %v1854_v35  ;;  %v1916_v6 = vadd.f32 %v3874_v51, %v3885_v24  ;;  %v1917_v11 = vadd.f32 %v3879_v13, %v3887_v26  ;;  %v1994_v39 = vmul.f32 %v4045_v38, %v1953_v33  ;;  %v2942_v24 = vpop.f32.mrb[33].mxu1  ;;  %v1121_v13 = vpop.permute.xlu1 %1120 }
 0x20e   : > { %v4592_v54 = vpack.c.bf16 %v3853_v0, %v3858_v49  ;;  %1212 = vst.msk [vmem:[#allocation2 + $0x128] sm:$0xff] %vm1174_vm2, %v1170_v4  ;;  %v884_v42 = vmin.f32 %v843_v32, 6.0  ;;  %v2045_v44 = vadd.f32 %v2009_v2, %v1932_v53  ;;  %v2106_v55 = vmul.f32 %v4053_v60, %v2065_v17  ;;  %v1248_v0 = vld [vmem:[#allocation2 + $0xd8] sm:$0xff]  ;;  %v4198_v32 = vld [vmem:[#allocation2 + $0xe2] sm:$0xff]  ;;  %v4200_v53 = vld [vmem:[#allocation2 + $0xea] sm:$0xff] }
 0x20f   : > { %v2107_v51 = vmul.f32 %v4053_v60, %v2066_v15  ;;  %v2046_v26 = vadd.f32 %v2010_v27, %v1933_v22  ;;  %v2029_v45 = vadd.f32 %v3893_v37, %v1916_v6  ;;  %v2030_v63 = vadd.f32 %v1994_v39, %v1917_v11  ;;  %v1360_v49 = vld [vmem:[#allocation2 + $0xd1] sm:$0xff]  ;;  %v801_v1 = vpop.f32.mrb[34].mxu1  ;;  %v1665_v39 = vld [vmem:[#allocation2 + $0xe3] sm:$0xff] }
 0x210   : > { %2980 = vmatpush3.bf16.xpose.msk.msra.mxu1 %vm3978_vm3, %v4592_v54  ;;  %v797_v28 = vadd.f32 %v3922_v19, %v796_v31  ;;  %v1171_v5 = vmul.f32 %v1121_v13, %v884_v42  ;;  %v2158_v10 = vadd.f32 %v2122_v56, %v2045_v44  ;;  %v1288_v36 = vmul.f32 %v4060_v43, %v1247_v23  ;;  %v2945_v3 = vpop.f32.mrb[35].mxu1 }
 0x211   : > { %v2159_v62 = vadd.f32 %v2123_v41, %v2046_v26  ;;  %v2142_v25 = vadd.f32 %v2106_v55, %v2029_v45  ;;  %v2143_v7 = vadd.f32 %v2107_v51, %v2030_v63  ;;  %v802_v48 = vadd.f32 %v3922_v19, %v801_v1  ;;  %v1131_v31 = vpop.permute.xlu1 %1130  ;;  %v1666_v55 = vld [vmem:[#allocation2 + $0xeb] sm:$0xff]  ;;  %v4213_v45 = vld [vmem:[#allocation2 + $0xfc] sm:$0xff] }
 0x212   : > { %v844_v59 = vmax.f32 %v797_v28, 0.0  ;;  %1213 = vst.msk [vmem:[#allocation2 + $0x130] sm:$0xff] %vm1174_vm2, %v1171_v5  ;;  %v2201_v37 = vadd.f32 %v4093_v61, %v2158_v10  ;;  %v1289_v21 = vmul.f32 %v4060_v43, %v1248_v0  ;;  %v1401_v9 = vmul.f32 %v3950_v29, %v1360_v49  ;;  %v1970_v63 = vld [vmem:[#allocation2 + $0xf5] sm:$0xff] }
 0x213   : > { %v2202_v40 = vadd.f32 %v4093_v61, %v2159_v62  ;;  %v2185_v2 = vadd.f32 %v4093_v61, %v2142_v25  ;;  %v2186_v33 = vadd.f32 %v4093_v61, %v2143_v7  ;;  %v845_v35 = vmax.f32 %v802_v48, 0.0  ;;  %v2083_v10 = vld [vmem:[#allocation2 + $0xf6] sm:$0xff] }
 0x214   : > { %v885_v46 = vmin.f32 %v844_v59, 6.0  ;;  %v2237_v16 = vmax.f32 %v2201_v37, 0.0  ;;  %v1402_v27 = vmul.f32 %v3950_v29, %v1361_v34  ;;  %v1437_v56 = vadd.f32 %v1401_v9, %v1288_v36  ;;  %v2084_v36 = vld [vmem:[#allocation2 + $0xfe] sm:$0xff]  ;;  %v1231_v1 = vld [vmem:[#allocation2 + $0x50] sm:$0xff] }
 0x215   : > { %v2238_v17 = vmax.f32 %v2202_v40, 0.0  ;;  %v2221_v19 = vmax.f32 %v2185_v2, 0.0  ;;  %v2222_v15 = vmax.f32 %v2186_v33, 0.0  ;;  %v886_v22 = vmin.f32 %v845_v35, 6.0  ;;  %v1232_v34 = vld [vmem:[#allocation2 + $0x58] sm:$0xff] }
 0x216   : > { %v1172_v4 = vmul.f32 %v1126_v50, %v885_v46  ;;  %v2273_v41 = vmin.f32 %v2237_v16, 6.0  ;;  %v1438_v6 = vadd.f32 %v1402_v27, %v1289_v21  ;;  %v1514_v11 = vmul.f32 %v3966_v47, %v4131_v12  ;;  %v4211_v12 = vld [vmem:[#allocation2 + $0xf4] sm:$0xff]  ;;  %v4234_v46 = vld [vmem:[#allocation2 + $0x62] sm:$0xff]  ;;  %v4236_v50 = vld [vmem:[#allocation2 + $0x6a] sm:$0xff] }
 0x217   : > { %v2274_v23 = vmin.f32 %v2238_v17, 6.0  ;;  %v2257_v54 = vmin.f32 %v2221_v19, 6.0  ;;  %v2258_v42 = vmin.f32 %v2222_v15, 6.0  ;;  %v1515_v44 = vmul.f32 %v3966_v47, %v4133_v30  ;;  %v1971_v30 = vld [vmem:[#allocation2 + $0xfd] sm:$0xff]  ;;  %v1344_v37 = vld [vmem:[#allocation2 + $0x51] sm:$0xff] }
 0x218   : > { %1214 = vst.msk [vmem:[#allocation2 + $0x138] sm:$0xff] %vm1174_vm2, %v1172_v4  ;;  %v1173_v51 = vmul.f32 %v1131_v31, %v886_v22  ;;  %v1550_v24 = vadd.f32 %v1514_v11, %v1437_v56  ;;  %v1593_v13 = vmul.f32 %v3993_v52, %v4198_v32  ;;  %v1594_v26 = vmul.f32 %v3993_v52, %v4200_v53  ;;  %v1345_v40 = vld [vmem:[#allocation2 + $0x59] sm:$0xff]  ;;  %v1649_v17 = vld [vmem:[#allocation2 + $0x63] sm:$0xff]  ;;  %v1650_v19 = vld [vmem:[#allocation2 + $0x6b] sm:$0xff] }
 0x219   : > { %v2981_v28 = vpack.c.bf16 %v2274_v23, %v2273_v41  ;;  %v2984_v0 = vpack.c.bf16 %v2258_v42, %v2257_v54  ;;  %v1551_v49 = vadd.f32 %v1515_v44, %v1438_v6  ;;  %v1706_v5 = vmul.f32 %v4008_v8, %v1665_v39  ;;  %v3075_v41 = vld [vmem:[#allocation2 + $0x52] sm:$0xff]  ;;  %v3076_v6 = vld [vmem:[#allocation2 + $0x5a] sm:$0xff] }
 0x21a   : > { %1216 = vst.msk [vmem:[#allocation2 + $0x140] sm:$0xf] %vm1215_vm4, %v1173_v51  ;;  %v1629_v62 = vadd.f32 %v1593_v13, %v1550_v24  ;;  %v1707_v25 = vmul.f32 %v4008_v8, %v1666_v55  ;;  %v1819_v7 = vmul.f32 %v4025_v58, %v4153_v20  ;;  %v1820_v59 = vmul.f32 %v4025_v58, %v4155_v14  ;;  %v4248_v42 = vld [vmem:[#allocation2 + $0x74] sm:$0xff]  ;;  %v4250_v44 = vld [vmem:[#allocation2 + $0x7c] sm:$0xff] }
 0x21b   : > { %2983 = vmatprep.subr.msk.bf16.mxu1 %vm3978_vm3, %v2981_v28  ;;  %v1630_v48 = vadd.f32 %v1594_v26, %v1551_v49  ;;  %v1898_v21 = vmul.f32 %v4034_v57, %v4211_v12  ;;  %v1899_v9 = vmul.f32 %v4034_v57, %v4213_v45  ;;  %v2011_v3 = vmul.f32 %v4045_v38, %v1970_v63  ;;  %v1954_v26 = vld [vmem:[#allocation2 + $0x75] sm:$0xff]  ;;  %v1955_v63 = vld [vmem:[#allocation2 + $0x7d] sm:$0xff] }
 0x21c   : > { %2986 = vmatpush3.bf16.xpose.msk.msra.mxu1 %vm3978_vm3, %v2984_v0  ;;  %v1742_v20 = vadd.f32 %v1706_v5, %v1629_v62  ;;  %v2012_v14 = vmul.f32 %v4045_v38, %v1971_v30  ;;  %v2124_v2 = vmul.f32 %v4053_v60, %v2083_v10  ;;  %v2125_v33 = vmul.f32 %v4053_v60, %v2084_v36  ;;  %v3077_v49 = vld [vmem:[#allocation2 + $0x64] sm:$0xff]  ;;  %v3078_v30 = vld [vmem:[#allocation2 + $0x6c] sm:$0xff]  ;;  %v2067_v36 = vld [vmem:[#allocation2 + $0x76] sm:$0xff] }
 0x21d   : > { %v1743_v16 = vadd.f32 %v1707_v25, %v1630_v48  ;;  %v1272_v35 = vmul.f32 %v4060_v43, %v1231_v1  ;;  %v1273_v27 = vmul.f32 %v4060_v43, %v1232_v34  ;;  %v1385_v56 = vmul.f32 %v3950_v29, %v1344_v37  ;;  %v2068_v62 = vld [vmem:[#allocation2 + $0x7e] sm:$0xff]  ;;  %v1250_v37 = vld [vmem:[#allocation2 + $0xe8] sm:$0xff] }
 0x21e   : > { %v1855_v15 = vadd.f32 %v1819_v7, %v1742_v20  ;;  %v1386_v4 = vmul.f32 %v3950_v29, %v1345_v40  ;;  %v1498_v22 = vmul.f32 %v3075_v41, %v3966_v47  ;;  %v1499_v11 = vmul.f32 %v3076_v6, %v3966_v47  ;;  %v1249_v34 = vld [vmem:[#allocation2 + $0xe0] sm:$0xff] }
 0x21f   : > { %v1856_v39 = vadd.f32 %v1820_v59, %v1743_v16  ;;  %v1421_v31 = vadd.f32 %v1385_v56, %v1272_v35  ;;  %v1577_v23 = vmul.f32 %v3993_v52, %v4234_v46  ;;  %v1578_v54 = vmul.f32 %v3993_v52, %v4236_v50  ;;  %v1362_v20 = vld [vmem:[#allocation2 + $0xe1] sm:$0xff]  ;;  %v1363_v16 = vld [vmem:[#allocation2 + $0xe9] sm:$0xff] }
 0x220   : > { %v1934_v55 = vadd.f32 %v1898_v21, %v1855_v15  ;;  %v1422_v51 = vadd.f32 %v1386_v4, %v1273_v27  ;;  %v1690_v24 = vmul.f32 %v4008_v8, %v1649_v17  ;;  %v1691_v13 = vmul.f32 %v4008_v8, %v1650_v19 }
 0x221   : > { %v1935_v28 = vadd.f32 %v1899_v9, %v1856_v39  ;;  %v1534_v0 = vadd.f32 %v1498_v22, %v1421_v31  ;;  %v1803_v5 = vmul.f32 %v3077_v49, %v4025_v58  ;;  %v1804_v10 = vmul.f32 %v3078_v30, %v4025_v58 }
 0x222   : > { %v2047_v25 = vadd.f32 %v2011_v3, %v1934_v55  ;;  %v1535_v7 = vadd.f32 %v1499_v11, %v1422_v51  ;;  %v1882_v59 = vmul.f32 %v4034_v57, %v4248_v42  ;;  %v1883_v1 = vmul.f32 %v4034_v57, %v4250_v44  ;;  %v4269_v11 = vld [vmem:[#allocation2 + $0xf2] sm:$0xff] }
 0x223   : > { %v2048_v48 = vadd.f32 %v2012_v14, %v1935_v28  ;;  %v1613_v21 = vadd.f32 %v1577_v23, %v1534_v0  ;;  %v1995_v9 = vmul.f32 %v4045_v38, %v1954_v26  ;;  %v1996_v40 = vmul.f32 %v4045_v38, %v1955_v63  ;;  %v1668_v26 = vld [vmem:[#allocation2 + $0xfb] sm:$0xff] }
 0x224   : > { %v2160_v35 = vadd.f32 %v2124_v2, %v2047_v25  ;;  %v1614_v27 = vadd.f32 %v1578_v54, %v1535_v7  ;;  %v2108_v3 = vmul.f32 %v4053_v60, %v2067_v36  ;;  %v2109_v56 = vmul.f32 %v4053_v60, %v2068_v62  ;;  %v4271_v2 = vld [vmem:[#allocation2 + $0xfa] sm:$0xff]  ;;  %v4282_v62 = vld [vmem:[#allocation2 + $0x104] sm:$0xff] }
 0x225   : > { %v2161_v17 = vadd.f32 %v2125_v33, %v2048_v48  ;;  %v1726_v19 = vadd.f32 %v1690_v24, %v1613_v21  ;;  %v1290_v15 = vmul.f32 %v4060_v43, %v1249_v34  ;;  %v1291_v4 = vmul.f32 %v4060_v43, %v1250_v37  ;;  %v4286_v34 = vld [vmem:[#allocation2 + $0x10c] sm:$0xff] }
 0x226   : > { %v2203_v14 = vadd.f32 %v4093_v61, %v2160_v35  ;;  %v1727_v41 = vadd.f32 %v1691_v13, %v1614_v27  ;;  %v1403_v22 = vmul.f32 %v3950_v29, %v1362_v20  ;;  %v1404_v6 = vmul.f32 %v3950_v29, %v1363_v16  ;;  %v1667_v13 = vld [vmem:[#allocation2 + $0xf3] sm:$0xff]  ;;  %v1972_v20 = vld [vmem:[#allocation2 + $0x105] sm:$0xff] }
 0x227   : > { %v2204_v39 = vadd.f32 %v4093_v61, %v2161_v17  ;;  %v1839_v31 = vadd.f32 %v1803_v5, %v1726_v19  ;;  %v1516_v33 = vmul.f32 %v3966_v47, %v4198_v32  ;;  %v1517_v23 = vmul.f32 %v3966_v47, %v4200_v53  ;;  %v2085_v16 = vld [vmem:[#allocation2 + $0x106] sm:$0xff]  ;;  %v2086_v19 = vld [vmem:[#allocation2 + $0x10e] sm:$0xff] }
 0x228   : > { %v2239_v54 = vmax.f32 %v2203_v14, 0.0  ;;  %v1840_v55 = vadd.f32 %v1804_v10, %v1727_v41  ;;  %v1439_v51 = vadd.f32 %v1403_v22, %v1290_v15  ;;  %v1440_v24 = vadd.f32 %v1404_v6, %v1291_v4  ;;  %v1233_v41 = vld [vmem:[#allocation2 + $0x60] sm:$0xff] }
 0x229   : > { %v2240_v63 = vmax.f32 %v2204_v39, 0.0  ;;  %v1918_v28 = vadd.f32 %v1882_v59, %v1839_v31  ;;  %v1595_v0 = vmul.f32 %v3993_v52, %v4269_v11  ;;  %v1596_v49 = vmul.f32 %v3993_v52, %v4271_v2  ;;  %v1346_v22 = vld [vmem:[#allocation2 + $0x61] sm:$0xff] }
 0x22a   : > { %v2275_v5 = vmin.f32 %v2239_v54, 6.0  ;;  %v1919_v30 = vadd.f32 %v1883_v1, %v1840_v55  ;;  %v1552_v32 = vadd.f32 %v1516_v33, %v1439_v51  ;;  %v1553_v36 = vadd.f32 %v1517_v23, %v1440_v24  ;;  %v1973_v1 = vld [vmem:[#allocation2 + $0x10d] sm:$0xff] }
 0x22b   : > { %v2276_v53 = vmin.f32 %v2240_v63, 6.0  ;;  %v2031_v10 = vadd.f32 %v1995_v9, %v1918_v28  ;;  %v1708_v25 = vmul.f32 %v4008_v8, %v1667_v13  ;;  %v1709_v7 = vmul.f32 %v4008_v8, %v1668_v26 }
 0x22c   : > { %v2032_v59 = vadd.f32 %v1996_v40, %v1919_v30  ;;  %v1631_v37 = vadd.f32 %v1595_v0, %v1552_v32  ;;  %v1632_v48 = vadd.f32 %v1596_v49, %v1553_v36  ;;  %v1821_v21 = vmul.f32 %v4025_v58, %v4211_v12  ;;  %v1234_v12 = vld [vmem:[#allocation2 + $0x68] sm:$0xff]  ;;  %v4308_v49 = vld [vmem:[#allocation2 + $0x72] sm:$0xff] }
 0x22d   : > { %v2987_v35 = vpack.c.bf16 %v2276_v53, %v2275_v5  ;;  %v2144_v27 = vadd.f32 %v2108_v3, %v2031_v10  ;;  %v1822_v9 = vmul.f32 %v4025_v58, %v4213_v45  ;;  %v1900_v17 = vmul.f32 %v4034_v57, %v4282_v62  ;;  %v4310_v5 = vld [vmem:[#allocation2 + $0x7a] sm:$0xff] }
 0x22e   : > { %v2145_v15 = vadd.f32 %v2109_v56, %v2032_v59  ;;  %v1744_v4 = vadd.f32 %v1708_v25, %v1631_v37  ;;  %v1745_v40 = vadd.f32 %v1709_v7, %v1632_v48  ;;  %v1901_v14 = vmul.f32 %v4034_v57, %v4286_v34  ;;  %v1347_v56 = vld [vmem:[#allocation2 + $0x69] sm:$0xff]  ;;  %v1651_v37 = vld [vmem:[#allocation2 + $0x73] sm:$0xff]  ;;  %v1652_v48 = vld [vmem:[#allocation2 + $0x7b] sm:$0xff] }
 0x22f   : > { %2989 = vmatprep.subr.msk.bf16.mxu1 %vm3978_vm3, %v2987_v35  ;;  %v2187_v3 = vadd.f32 %v4093_v61, %v2144_v27  ;;  %v2013_v45 = vmul.f32 %v4045_v38, %v1972_v20  ;;  %v2014_v6 = vmul.f32 %v4045_v38, %v1973_v1  ;;  %v2126_v39 = vmul.f32 %v4053_v60, %v2085_v16  ;;  %v4323_v27 = vld [vmem:[#allocation2 + $0x84] sm:$0xff] }
 0x230   : > { %v2188_v31 = vadd.f32 %v4093_v61, %v2145_v15  ;;  %v1857_v33 = vadd.f32 %v1821_v21, %v1744_v4  ;;  %v1858_v23 = vadd.f32 %v1822_v9, %v1745_v40  ;;  %v2127_v54 = vmul.f32 %v4053_v60, %v2086_v19  ;;  %v3079_v21 = vld [vmem:[#allocation2 + $0x82] sm:$0xff]  ;;  %v4325_v9 = vld [vmem:[#allocation2 + $0x8c] sm:$0xff] }
 0x231   : > { %v2223_v55 = vmax.f32 %v2187_v3, 0.0  ;;  %v1274_v51 = vmul.f32 %v4060_v43, %v1233_v41  ;;  %v1275_v24 = vmul.f32 %v4060_v43, %v1234_v12  ;;  %v1387_v13 = vmul.f32 %v3950_v29, %v1346_v22 }
 0x232   : > { %v2224_v26 = vmax.f32 %v2188_v31, 0.0  ;;  %v1936_v63 = vadd.f32 %v1900_v17, %v1857_v33  ;;  %v1937_v28 = vadd.f32 %v1901_v14, %v1858_v23  ;;  %v1388_v0 = vmul.f32 %v3950_v29, %v1347_v56  ;;  %v3080_v17 = vld [vmem:[#allocation2 + $0x8a] sm:$0xff]  ;;  %v1252_v33 = vld [vmem:[#allocation2 + $0xf8] sm:$0xff] }
 0x233   : > { %v2259_v30 = vmin.f32 %v2223_v55, 6.0  ;;  %v1423_v32 = vadd.f32 %v1387_v13, %v1274_v51  ;;  %v1500_v36 = vmul.f32 %v3966_v47, %v4234_v46  ;;  %v1501_v53 = vmul.f32 %v3966_v47, %v4236_v50  ;;  %v1956_v14 = vld [vmem:[#allocation2 + $0x85] sm:$0xff]  ;;  %v1365_v13 = vld [vmem:[#allocation2 + $0xf9] sm:$0xff] }
 0x234   : > { %v2260_v10 = vmin.f32 %v2224_v26, 6.0  ;;  %v2049_v25 = vadd.f32 %v2013_v45, %v1936_v63  ;;  %v2050_v7 = vadd.f32 %v2014_v6, %v1937_v28  ;;  %v1424_v59 = vadd.f32 %v1388_v0, %v1275_v24  ;;  %v1957_v45 = vld [vmem:[#allocation2 + $0x8d] sm:$0xff]  ;;  %v1366_v28 = vld [vmem:[#allocation2 + $0x101] sm:$0xff] }
 0x235   : > { %v4317_v29 = vmul.f32 %v3079_v21, %v3993_v52  ;;  %v1536_v20 = vadd.f32 %v1500_v36, %v1423_v32  ;;  %v1579_v1 = vmul.f32 %v3993_v52, %v4308_v49  ;;  %v1580_v46 = vmul.f32 %v3993_v52, %v4310_v5  ;;  %v1251_v6 = vld [vmem:[#allocation2 + $0xf0] sm:$0xff] }
 0x236   : > { %v2990_v16 = vpack.c.bf16 %v2260_v10, %v2259_v30  ;;  %v2162_v35 = vadd.f32 %v2126_v39, %v2049_v25  ;;  %v2163_v47 = vadd.f32 %v2127_v54, %v2050_v7  ;;  %v1537_v50 = vadd.f32 %v1501_v53, %v1424_v59  ;;  %v1364_v24 = vld [vmem:[#allocation2 + $0xf1] sm:$0xff]  ;;  %v1367_v0 = vld [vmem:[#allocation2 + $0x109] sm:$0xff] }
 0x237   : > { %v4328_v19 = vmul.f32 %v3080_v17, %v3993_v52  ;;  %v1615_v15 = vadd.f32 %v1579_v1, %v1536_v20  ;;  %v1692_v4 = vmul.f32 %v4008_v8, %v1651_v37  ;;  %v1693_v40 = vmul.f32 %v4008_v8, %v1652_v48  ;;  %v2069_v52 = vld [vmem:[#allocation2 + $0x86] sm:$0xff]  ;;  %v2070_v7 = vld [vmem:[#allocation2 + $0x8e] sm:$0xff] }
 0x238   : > { %2992 = vmatpush3.bf16.xpose.msk.msra.mxu1 %vm3978_vm3, %v2990_v16  ;;  %v2205_v41 = vadd.f32 %v4093_v61, %v2162_v35  ;;  %v2206_v12 = vadd.f32 %v4093_v61, %v2163_v47  ;;  %v1616_v22 = vadd.f32 %v1580_v46, %v1537_v50  ;;  %v1805_v3 = vmul.f32 %v4025_v58, %v4248_v42  ;;  %v1253_v42 = vld [vmem:[#allocation2 + $0x100] sm:$0xff]  ;;  %v1254_v53 = vld [vmem:[#allocation2 + $0x108] sm:$0xff] }
 0x239   : > { %v1728_v39 = vadd.f32 %v1692_v4, %v1615_v15  ;;  %v1806_v56 = vmul.f32 %v4025_v58, %v4250_v44  ;;  %v1884_v8 = vmul.f32 %v4034_v57, %v4323_v27  ;;  %v1885_v31 = vmul.f32 %v4034_v57, %v4325_v9  ;;  %v1479_v16 = vld [vmem:[#allocation2 + $0x102] sm:$0xff]  ;;  %v1480_v15 = vld [vmem:[#allocation2 + $0x10a] sm:$0xff] }
 0x23a   : > { %v2241_v23 = vmax.f32 %v2205_v41, 0.0  ;;  %v2242_v54 = vmax.f32 %v2206_v12, 0.0  ;;  %v1729_v55 = vadd.f32 %v1693_v40, %v1616_v22  ;;  %v1997_v51 = vmul.f32 %v4045_v38, %v1956_v14  ;;  %v4366_v41 = vld [vmem:[%s4579_s4 + $0x2] ss:$0 sm:$0xff] }
 0x23b   : > { %v1841_v26 = vadd.f32 %v1805_v3, %v1728_v39  ;;  %v1998_v63 = vmul.f32 %v4045_v38, %v1957_v45  ;;  %v2110_v58 = vmul.f32 %v4053_v60, %v2069_v52  ;;  %v1292_v44 = vmul.f32 %v4060_v43, %v1251_v6  ;;  %v4353_v38 = vld [vmem:[%s4579_s4 + $0x1] ss:$0 sm:$0xff]  ;;  %v1481_v3 = vld [vmem:[#allocation2 + $0x112] sm:$0xff] }
 0x23c   : > { %v2277_v30 = vmin.f32 %v2241_v23, 6.0  ;;  %v2278_v32 = vmin.f32 %v2242_v54, 6.0  ;;  %v1842_v36 = vadd.f32 %v1806_v56, %v1729_v55  ;;  %v1293_v10 = vmul.f32 %v4060_v43, %v1252_v33  ;;  %v1482_v45 = vld [vmem:[#allocation2 + $0x11a] sm:$0xff]  ;;  %v1669_v33 = vld [vmem:[#allocation2 + $0x103] sm:$0xff] }
 0x23d   : > { %v1920_v25 = vadd.f32 %v1884_v8, %v1841_v26  ;;  %v1294_v59 = vmul.f32 %v4060_v43, %v1253_v42  ;;  %v1405_v37 = vmul.f32 %v4353_v38, %v1364_v24  ;;  %v1406_v48 = vmul.f32 %v4353_v38, %v1365_v13  ;;  %v3083_v39 = vld [vmem:[#allocation2 + $0x94] sm:$0xff]  ;;  %v4381_v55 = vld [vmem:[%s4579_s4 + $0x3] ss:$0 sm:$0xff] }
 0x23e   : > { %v2993_v21 = vpack.c.bf16 %v2278_v32, %v2277_v30  ;;  %v1921_v20 = vadd.f32 %v1885_v31, %v1842_v36  ;;  %v1407_v1 = vmul.f32 %v4353_v38, %v1366_v28  ;;  %v1408_v46 = vmul.f32 %v4353_v38, %v1367_v0  ;;  %v1671_v26 = vld [vmem:[#allocation2 + $0x113] sm:$0xff]  ;;  %v4391_v28 = vld [vmem:[%s4579_s4 + $0x4] ss:$0 sm:$0xff]  ;;  %v1672_v36 = vld [vmem:[#allocation2 + $0x11b] sm:$0xff] }
 0x23f   : > { %v2033_v35 = vadd.f32 %v1997_v51, %v1920_v25  ;;  %v1295_v47 = vmul.f32 %v4060_v43, %v1254_v53  ;;  %v1441_v50 = vadd.f32 %v1405_v37, %v1292_v44  ;;  %v1442_v17 = vadd.f32 %v1406_v48, %v1293_v10  ;;  %v1670_v51 = vld [vmem:[#allocation2 + $0x10b] sm:$0xff]  ;;  %v4398_v10 = vld [vmem:[%s4579_s4 + $0x6] ss:$0 sm:$0xff]  ;;  %v3087_v25 = vld [vmem:[#allocation2 + $0x9c] sm:$0xff] }
 0x240   : > { %2995 = vmatprep.subr.msk.bf16.mxu1 %vm3978_vm3, %v2993_v21  ;;  %v2034_v4 = vadd.f32 %v1998_v63, %v1921_v20  ;;  %v2111_v40 = vmul.f32 %v4053_v60, %v2070_v7  ;;  %v1443_v14 = vadd.f32 %v1407_v1, %v1294_v59  ;;  %v1518_v12 = vmul.f32 %v4366_v41, %v4269_v11  ;;  %v1784_v21 = vld [vmem:[#allocation2 + $0x114] sm:$0xff] }
 0x241   : > { %v2146_v22 = vadd.f32 %v2110_v58, %v2033_v35  ;;  %v1444_v43 = vadd.f32 %v1408_v46, %v1295_v47  ;;  %v1519_v52 = vmul.f32 %v4366_v41, %v4271_v2  ;;  %v1520_v6 = vmul.f32 %v4366_v41, %v1479_v16  ;;  %v4407_v35 = vld [vmem:[%s4579_s4 + $0x5] ss:$0 sm:$0xff] }
 0x242   : > { %v4374_v60 = vmul.f32 %v3083_v39, %v4034_v57  ;;  %v2147_v56 = vadd.f32 %v2111_v40, %v2034_v4  ;;  %v1521_v8 = vmul.f32 %v4366_v41, %v1480_v15  ;;  %v1554_v31 = vadd.f32 %v1518_v12, %v1441_v50  ;;  %v1974_v40 = vld [vmem:[#allocation2 + $0x115] sm:$0xff] }
 0x243   : > { %v2189_v11 = vadd.f32 %v4093_v61, %v2146_v22  ;;  %v1555_v23 = vadd.f32 %v1519_v52, %v1442_v17  ;;  %v1556_v54 = vadd.f32 %v1520_v6, %v1443_v14  ;;  %v1597_v2 = vmul.f32 %v4381_v55, %v1479_v16  ;;  %v1785_v16 = vld [vmem:[#allocation2 + $0x11c] sm:$0xff]  ;;  %v1235_v6 = vld [vmem:[#allocation2 + $0x70] sm:$0xff] }
 0x244   : > { %v2190_v57 = vadd.f32 %v4093_v61, %v2147_v56  ;;  %v1598_v42 = vmul.f32 %v4381_v55, %v1480_v15  ;;  %v1599_v24 = vmul.f32 %v4381_v55, %v1481_v3  ;;  %v1600_v13 = vmul.f32 %v4381_v55, %v1482_v45  ;;  %v1975_v52 = vld [vmem:[#allocation2 + $0x11d] sm:$0xff]  ;;  %v1348_v39 = vld [vmem:[#allocation2 + $0x71] sm:$0xff] }
 0x245   : > { %v2225_v63 = vmax.f32 %v2189_v11, 0.0  ;;  %v1557_v58 = vadd.f32 %v1521_v8, %v1444_v43  ;;  %v1633_v44 = vadd.f32 %v1597_v2, %v1554_v31  ;;  %v1710_v0 = vmul.f32 %v4391_v28, %v1669_v33  ;;  %v2087_v31 = vld [vmem:[#allocation2 + $0x116] sm:$0xff]  ;;  %v4429_v2 = vld [vmem:[%s4579_s4 + $0x7] ss:$0 sm:$0xff] }
 0x246   : > { %v2226_v30 = vmax.f32 %v2190_v57, 0.0  ;;  %v1634_v32 = vadd.f32 %v1598_v42, %v1555_v23  ;;  %v1635_v61 = vadd.f32 %v1599_v24, %v1556_v54  ;;  %v1711_v53 = vmul.f32 %v4391_v28, %v1670_v51  ;;  %v1236_v33 = vld [vmem:[#allocation2 + $0x78] sm:$0xff]  ;;  %v4436_v24 = vld [vmem:[%s4579_s4] ss:$0 sm:$0xff] }
 0x247   : > { %v4401_v7 = vmul.f32 %v3087_v25, %v4398_v10  ;;  %v1636_v59 = vadd.f32 %v1600_v13, %v1557_v58  ;;  %v1712_v37 = vmul.f32 %v4391_v28, %v1671_v26  ;;  %v1746_v48 = vadd.f32 %v1710_v0, %v1633_v44  ;;  %v2088_v51 = vld [vmem:[#allocation2 + $0x11e] sm:$0xff]  ;;  %v4443_v58 = vld [vmem:[%s4579_s4 + $0x8] ss:$0 sm:$0xff] }
 0x248   : > { %v2261_v20 = vmin.f32 %v2225_v63, 6.0  ;;  %v2262_v1 = vmin.f32 %v2226_v30, 6.0  ;;  %v1747_v46 = vadd.f32 %v1711_v53, %v1634_v32  ;;  %v1823_v47 = vmul.f32 %v4407_v35, %v4282_v62  ;;  %v1653_v32 = vld [vmem:[#allocation2 + $0x83] sm:$0xff] }
 0x249   : > { %v4412_v50 = vmul.f32 %v4366_v41, %v1481_v3  ;;  %v1713_v17 = vmul.f32 %v4391_v28, %v1672_v36  ;;  %v1748_v15 = vadd.f32 %v1712_v37, %v1635_v61  ;;  %v1824_v4 = vmul.f32 %v4407_v35, %v4286_v34  ;;  %v1349_v34 = vld [vmem:[#allocation2 + $0x79] sm:$0xff]  ;;  %v1654_v61 = vld [vmem:[#allocation2 + $0x8b] sm:$0xff] }
 0x24a   : > { %v2996_v14 = vpack.c.bf16 %v2262_v1, %v2261_v20  ;;  %v1825_v12 = vmul.f32 %v4407_v35, %v1784_v21  ;;  %v1859_v22 = vadd.f32 %v1823_v47, %v1746_v48  ;;  %v1902_v43 = vmul.f32 %v4398_v10, %v1784_v21  ;;  %v1958_v1 = vld [vmem:[#allocation2 + $0x95] sm:$0xff] }
 0x24b   : > { %v4420_v62 = vmul.f32 %v4366_v41, %v1482_v45  ;;  %v1749_v3 = vadd.f32 %v1713_v17, %v1636_v59  ;;  %v1860_v56 = vadd.f32 %v1824_v4, %v1747_v46  ;;  %v1903_v8 = vmul.f32 %v4398_v10, %v1785_v16  ;;  %v4453_v46 = vld [vmem:[#allocation2 + $0x124] sm:$0xff] }
 0x24c   : > { %2998 = vmatpush3.bf16.xpose.msk.msra.mxu1 %vm3978_vm3, %v2996_v14  ;;  %v1826_v11 = vmul.f32 %v4407_v35, %v1785_v16  ;;  %v1861_v23 = vadd.f32 %v1825_v12, %v1748_v15  ;;  %v1938_v54 = vadd.f32 %v1902_v43, %v1859_v22  ;;  %v2015_v45 = vmul.f32 %v4429_v2, %v1974_v40  ;;  %v1959_v4 = vld [vmem:[#allocation2 + $0x9d] sm:$0xff]  ;;  %v4457_v40 = vld [vmem:[#allocation2 + $0x12c] sm:$0xff] }
 0x24d   : > { %v1939_v57 = vadd.f32 %v1903_v8, %v1860_v56  ;;  %v2016_v42 = vmul.f32 %v4429_v2, %v1975_v52  ;;  %v1276_v13 = vmul.f32 %v4436_v24, %v1235_v6  ;;  %v1389_v26 = vmul.f32 %v4353_v38, %v1348_v39  ;;  %v1976_v22 = vld [vmem:[#allocation2 + $0x125] sm:$0xff]  ;;  %v2071_v39 = vld [vmem:[#allocation2 + $0x96] sm:$0xff]  ;;  %v1977_v56 = vld [vmem:[#allocation2 + $0x12d] sm:$0xff] }
 0x24e   : > { %v2051_v63 = vadd.f32 %v2015_v45, %v1938_v54  ;;  %v2128_v44 = vmul.f32 %v4443_v58, %v2087_v31  ;;  %v1277_v0 = vmul.f32 %v4436_v24, %v1236_v33  ;;  %v1390_v30 = vmul.f32 %v4353_v38, %v1349_v34  ;;  %v2089_v45 = vld [vmem:[#allocation2 + $0x126] sm:$0xff] }
 0x24f   : > { %v2052_v36 = vadd.f32 %v2016_v42, %v1939_v57  ;;  %v2129_v53 = vmul.f32 %v4443_v58, %v2088_v51  ;;  %v1425_v25 = vadd.f32 %v1389_v26, %v1276_v13  ;;  %v1502_v59 = vmul.f32 %v4366_v41, %v4308_v49  ;;  %v4462_v49 = vld [vmem:[%s4580_s5] ss:$0 sm:$0xff]  ;;  %v1255_v26 = vld [vmem:[#allocation2 + $0x110] sm:$0xff] }
 0x250   : > { %v1862_v37 = vadd.f32 %v1826_v11, %v1749_v3  ;;  %v2164_v48 = vadd.f32 %v2128_v44, %v2051_v63  ;;  %v1426_v21 = vadd.f32 %v1390_v30, %v1277_v0  ;;  %v1503_v20 = vmul.f32 %v4366_v41, %v4310_v5  ;;  %v2072_v11 = vld [vmem:[#allocation2 + $0x9e] sm:$0xff] }
 0x251   : > { %v2165_v16 = vadd.f32 %v2129_v53, %v2052_v36  ;;  %v1538_v47 = vadd.f32 %v1502_v59, %v1425_v25  ;;  %v1694_v17 = vmul.f32 %v4391_v28, %v1653_v32  ;;  %v1695_v15 = vmul.f32 %v4391_v28, %v1654_v61  ;;  %v2090_v32 = vld [vmem:[#allocation2 + $0x12e] sm:$0xff]  ;;  %v1256_v61 = vld [vmem:[#allocation2 + $0x118] sm:$0xff] }
 0x252   : > { %v2207_v14 = vadd.f32 %v4462_v49, %v2164_v48  ;;  %v1539_v5 = vadd.f32 %v1503_v20, %v1426_v21  ;;  %v1807_v41 = vmul.f32 %v4407_v35, %v4323_v27  ;;  %v1808_v12 = vmul.f32 %v4407_v35, %v4325_v9  ;;  %v1369_v36 = vld [vmem:[#allocation2 + $0x119] sm:$0xff]  ;;  %v1560_v48 = vld [vmem:[#allocation2 + $0x122] sm:$0xff] }
 0x253   : > { %v2208_v43 = vadd.f32 %v4462_v49, %v2165_v16  ;;  %v1617_v52 = vadd.f32 %v4317_v29, %v1538_v47  ;;  %v1999_v6 = vmul.f32 %v4429_v2, %v1958_v1  ;;  %v1904_v3 = vmul.f32 %v4398_v10, %v4453_v46  ;;  %v1561_v16 = vld [vmem:[#allocation2 + $0x12a] sm:$0xff] }
 0x254   : > { %v2243_v8 = vmax.f32 %v2207_v14, 0.0  ;;  %v1618_v31 = vadd.f32 %v4328_v19, %v1539_v5  ;;  %v2000_v27 = vmul.f32 %v4429_v2, %v1959_v4  ;;  %v1905_v9 = vmul.f32 %v4398_v10, %v4457_v40  ;;  %v1368_v19 = vld [vmem:[#allocation2 + $0x111] sm:$0xff] }
 0x255   : > { %v2244_v33 = vmax.f32 %v2208_v43, 0.0  ;;  %v1730_v34 = vadd.f32 %v1694_v17, %v1617_v52  ;;  %v1940_v54 = vadd.f32 %v1904_v3, %v1861_v23  ;;  %v2017_v29 = vmul.f32 %v4429_v2, %v1976_v22 }
 0x256   : > { %v1731_v51 = vadd.f32 %v1695_v15, %v1618_v31  ;;  %v2112_v57 = vmul.f32 %v4443_v58, %v2071_v39  ;;  %v1941_v42 = vadd.f32 %v1905_v9, %v1862_v37  ;;  %v2018_v13 = vmul.f32 %v4429_v2, %v1977_v56 }
 0x257   : > { %v2279_v63 = vmin.f32 %v2243_v8, 6.0  ;;  %v2280_v44 = vmin.f32 %v2244_v33, 6.0  ;;  %v1843_v0 = vadd.f32 %v1807_v41, %v1730_v34  ;;  %v2053_v30 = vadd.f32 %v2017_v29, %v1940_v54  ;;  %v1865_v8 = vld [vmem:[#allocation2 + $0x134] sm:$0xff]  ;;  %v1866_v33 = vld [vmem:[#allocation2 + $0x13c] sm:$0xff] }
 0x258   : > { %v1844_v53 = vadd.f32 %v1808_v12, %v1731_v51  ;;  %v2113_v23 = vmul.f32 %v4443_v58, %v2072_v11  ;;  %v2054_v25 = vadd.f32 %v2018_v13, %v1941_v42  ;;  %v2130_v59 = vmul.f32 %v4443_v58, %v2089_v45 }
 0x259   : > { %v2999_v21 = vpack.c.bf16 %v2280_v44, %v2279_v63  ;;  %v1922_v37 = vadd.f32 %v4374_v60, %v1843_v0  ;;  %v1296_v20 = vmul.f32 %v4436_v24, %v1255_v26  ;;  %v1409_v1 = vmul.f32 %v4353_v38, %v1368_v19  ;;  %v1978_v26 = vld [vmem:[#allocation2 + $0x135] sm:$0xff]  ;;  %v1979_v63 = vld [vmem:[#allocation2 + $0x13d] sm:$0xff] }
 0x25a   : > { %v1923_v47 = vadd.f32 %v4401_v7, %v1844_v53  ;;  %v2131_v17 = vmul.f32 %v4443_v58, %v2090_v32  ;;  %v1297_v15 = vmul.f32 %v4436_v24, %v1256_v61  ;;  %v1410_v4 = vmul.f32 %v4353_v38, %v1369_v36  ;;  %v1673_v7 = vld [vmem:[#allocation2 + $0x123] sm:$0xff]  ;;  %v1674_v24 = vld [vmem:[#allocation2 + $0x12b] sm:$0xff]  ;;  %v2091_v32 = vld [vmem:[#allocation2 + $0x136] sm:$0xff] }
 0x25b   : > { %3001 = vmatprep.subr.msk.bf16.mxu1 %vm3978_vm3, %v2999_v21  ;;  %v2035_v14 = vadd.f32 %v1999_v6, %v1922_v37  ;;  %v2166_v5 = vadd.f32 %v2130_v59, %v2053_v30  ;;  %v1445_v41 = vadd.f32 %v1409_v1, %v1296_v20  ;;  %v1601_v60 = vmul.f32 %v4381_v55, %v1560_v48  ;;  %v2092_v36 = vld [vmem:[#allocation2 + $0x13e] sm:$0xff] }
 0x25c   : > { %v2036_v12 = vadd.f32 %v2000_v27, %v1923_v47  ;;  %v2167_v22 = vadd.f32 %v2131_v17, %v2054_v25  ;;  %v1446_v43 = vadd.f32 %v1410_v4, %v1297_v15  ;;  %v1602_v52 = vmul.f32 %v4381_v55, %v1561_v16 }
 0x25d   : > { %v2148_v39 = vadd.f32 %v2112_v57, %v2035_v14  ;;  %v1558_v3 = vadd.f32 %v4412_v50, %v1445_v41  ;;  %v2209_v31 = vadd.f32 %v4462_v49, %v2166_v5  ;;  %v1714_v27 = vmul.f32 %v4391_v28, %v1673_v7  ;;  %v3093_v14 = vld [vmem:[%s4581_s6] sm:$0xff] }
 0x25e   : > { %v2149_v56 = vadd.f32 %v2113_v23, %v2036_v12  ;;  %v1559_v38 = vadd.f32 %v4420_v62, %v1446_v43  ;;  %v2210_v55 = vadd.f32 %v4462_v49, %v2167_v22  ;;  %v1715_v50 = vmul.f32 %v4391_v28, %v1674_v24  ;;  %v2290_v12 = vpop.permute.xlu0 %2289 }
 0x25f   : > { %v2191_v6 = vadd.f32 %v4462_v49, %v2148_v39  ;;  %v1637_v9 = vadd.f32 %v1601_v60, %v1558_v3  ;;  %v1827_v62 = vmul.f32 %v4407_v35, %v4453_v46  ;;  %v1906_v45 = vmul.f32 %v4398_v10, %v1865_v8 }
 0x260   : > { %v2192_v34 = vadd.f32 %v4462_v49, %v2149_v56  ;;  %v1638_v11 = vadd.f32 %v1602_v52, %v1559_v38  ;;  %v1828_v42 = vmul.f32 %v4407_v35, %v4457_v40  ;;  %v1907_v13 = vmul.f32 %v4398_v10, %v1866_v33 }
 0x261   : > { %v2227_v54 = vmax.f32 %v2191_v6, 0.0  ;;  %v1750_v29 = vadd.f32 %v1714_v27, %v1637_v9  ;;  %v2246_v28 = vmax.f32 %v2210_v55, 0.0  ;;  %v2019_v46 = vmul.f32 %v4429_v2, %v1978_v26 }
 0x262   : > { %v2228_v51 = vmax.f32 %v2192_v34, 0.0  ;;  %v1751_v57 = vadd.f32 %v1715_v50, %v1638_v11  ;;  %v2245_v23 = vmax.f32 %v2209_v31, 0.0  ;;  %v2020_v59 = vmul.f32 %v4429_v2, %v1979_v63 }
 0x263   : > { %v1863_v19 = vadd.f32 %v1827_v62, %v1750_v29  ;;  %v2263_v44 = vmin.f32 %v2227_v54, 6.0  ;;  %v2132_v10 = vmul.f32 %v4443_v58, %v2091_v32  ;;  %v2282_v40 = vmin.f32 %v2246_v28, 6.0 }
 0x264   : > { %v2264_v0 = vmin.f32 %v2228_v51, 6.0  ;;  %v1864_v30 = vadd.f32 %v1828_v42, %v1751_v57  ;;  %v2133_v21 = vmul.f32 %v4443_v58, %v2092_v36  ;;  %v3162_v37 = vmov 0.0|0.0  }
 0x265   : > { %v1942_v61 = vadd.f32 %v1906_v45, %v1863_v19  ;;  %v2281_v1 = vmin.f32 %v2245_v23, 6.0  ;;  %v4593_v5 = vmov 0.0  }
 0x266   : > { %v3002_v53 = vpack.c.bf16 %v2264_v0, %v2263_v44  ;;  %v1943_v25 = vadd.f32 %v1907_v13, %v1864_v30 }
 0x267   : > { %v2055_v35 = vadd.f32 %v2019_v46, %v1942_v61  ;;  %v3006_v17 = vpack.c.bf16 %v2282_v40, %v2281_v1 }
 0x268   : > { %3004 = vmatpush3.bf16.xpose.msk.msra.mxu1 %vm3978_vm3, %v3002_v53  ;;  %v2056_v48 = vadd.f32 %v2020_v59, %v1943_v25 }
 0x269   : > { %3005 = vmatprep.subr.bf16.mxu1 %v3162_v37  ;;  %v2168_v20 = vadd.f32 %v2132_v10, %v2055_v35 }
 0x26a   : > { %v2169_v16 = vadd.f32 %v2133_v21, %v2056_v48 }
 0x26b   : > { %v2211_v47 = vadd.f32 %v4462_v49, %v2168_v20 }
 0x26c   : > { %v2212_v2 = vadd.f32 %v4462_v49, %v2169_v16 }
 0x26d   : > { %v2247_v15 = vmax.f32 %v2211_v47, 0.0  ;;  %v2551_v49 = vpop.permute.xlu1 %2550 }
 0x26e   : > { %v2248_v4 = vmax.f32 %v2212_v2, 0.0 }
 0x26f   : > { %2815 = vmatmul.mubr.msk.f32.vlgmr.msra.gmra.mrb[36].mxu1 %vm1174_vm2, %v3093_v14  ;;  %v2283_v41 = vmin.f32 %v2247_v15, 6.0  ;;  %v2553_v22 = vpop.permute.xlu0 %2552 }
 0x270   : > { %3008 = vmatpush3.bf16.xpose.msk.msra.mxu1 %vm3978_vm3, %v3006_v17  ;;  %v2284_v58 = vmin.f32 %v2248_v4, 6.0  ;;  %2954 = vmatprep.mubr.msk.f32.mxu1 %vm3159_vm0, %v4593_v5  ;;  %v2557_v7 = vsel %vm2556_vm5, %v2551_v49, %v2553_v22 }
 0x271   : > { %3009 = vmatprep.subr.bf16.mxu1 %v3162_v37 }
 0x272   : > { %v3010_v60 = vpack.c.bf16 %v2284_v58, %v2283_v41  ;;  %v2555_v43 = vpop.permute.xlu1 %2554 }
 0x273   : > { %v2558_v24 = vsel %vm2556_vm5, %v2553_v22, %v2555_v43 }
 0x278   : > { %3012 = vmatpush3.bf16.xpose.msk.msra.mxu1 %vm3978_vm3, %v3010_v60 }
 0x27f   : > { %2955 = vmatmul.mubr.msk.f32.vlgmr.msra.gmra.mrb[38].mxu1 %vm1174_vm2, %v3093_v14 }
 0x342   : > { %v2469_v52 = vpop.f32.mrb[36].mxu1 }
 0x343   : > { %v2470_v39 = vadd.f32 %v2469_v52, %v2290_v12  ;;  %v2471_v3 = vpop.f32.mrb[37].mxu1 }
 0x344   : > { %v2472_v56 = vadd.f32 %v2471_v3, %v2290_v12 }
 0x345   : > { %v2562_v38 = vadd.f32 %v2557_v7, %v2470_v39 }
 0x346   : > { %v2563_v8 = vadd.f32 %v2558_v24, %v2472_v56 }
 0x347   : > { %2565 = vst [vmem:[%s298_s20] sm:$0xff] %v2562_v38 }
 0x348   : > { %2566 = vst [vmem:[%s298_s20 + $0x8] sm:$0xff] %v2563_v8 }
 0x352   : > { %v2540_v18 = vpop.f32.mrb[38].mxu1 }
 0x353   : > { %v2541_v6 = vadd.f32 %v2540_v18, %v2290_v12  ;;  %v2956_v31 = vpop.f32.mrb[39].mxu1 }
 0x355   : > { %v2564_v9 = vadd.f32 %v2555_v43, %v2541_v6 }
 0x357   : > { %2567 = vst.msk [vmem:[%s298_s20 + $0x10] sm:$0xff] %vm1174_vm2, %v2564_v9 }
 0x358   : > { %3107 = shalt.err (!%p3104_p3)
}
 0x359   : > { %s3108_s17 = scalar_lea.hbm %s4532_s25, 384  ;;  %s3112_s20 = scalar_lea.hbm %s4583_s8, 768 }
 0x35a   : > { %p3109_p4 = scmp.ne.s32.totalorder %s4532_s25, %s3108_s17  ;;  %p3113_p9 = scmp.lt.u32.totalorder %s4532_s25, %s4583_s8 }
 0x35b   : > { %p3114_p10 = scmp.lt.u32.totalorder %s3112_s20, %s3108_s17  ;;  %p3116_p12 = scmp.lt.u32.totalorder %s3108_s17, %s4532_s25 }
 0x35c   : > { %p3110_p7 = pnand %p3109_p4, %p3247_p5 }
 0x35d   : > { %p3115_p11 = por %p3114_p10, %p3113_p9 }
 0x35e   : > { %p3111_p8 = pneg %p3110_p7 }
 0x35f   : > { %p3117_p13 = por %p3116_p12, %p3115_p11 }
 0x361   : > { %p3118_p0 = pnand %p3117_p13, %p3111_p8 }
 0x363   : > { %3121 = shalt.err (!%p3118_p0)
}
 0x364   : > { %3018 = dma.vmem_to_hbm [thread:$0]  (%p3247_p5), %s4534_s23, 384, %s4532_s25, %s2569_s26  }
 0x365 PF: > { %p3024_p1 = scmp.ge.s32.totalorder %s3156_s30, 2  ;;  %s2595_s24 = sand.u32 1, %s3144_s27  }
 0x366   : > { %s2596_s10 = scalar_lea.sflag [#allocation4], %s2595_s24 }
 0x367   : > { %p3021_p2 = pnand %p3024_p1, %p3251_p6 }
 0x369   : > { %3139 = dma.done.wait (!%p3021_p2), %s2596_s10, 384  }
 0x36a   : > { %3141 = vsyncadd (!%p3021_p2), %s2596_s10, 4294966912  ;;  %p18_p3 = scmp.ge.s32.totalorder %s3234_s11, 4   ;;  %s4594_s27 = smov %s3148_s28 }
 0x36b   : > { %s4595_s28 = smov %s3152_s29  ;;  %s4596_s29 = smov %s3245_s14 }
 0x36c   : > { %s4597_s30 = smov %s3234_s11  ;;  %20 = sbr.rel (!%p18_p3) target bundleno = 3 (0x3), region = 87 }
 0x373   :  { %2601 = vsyncpa [#allocation4], 1 }
 0x374   :  { %2603 = vsyncpa [#allocation4 + $0x1], 1 }

</bundles_post_ra>
